<compile_context>
chip_gen: v5e
topology: v5e:2x2
jax: 0.10.0
libtpu: 0.0.40
codegen_flags: <defaults>
</compile_context>

<pallas_src>
import functools

import numpy as np
import jax
import jax.numpy as jnp
from jax.experimental import pallas as pl
from jax.experimental.pallas import tpu as pltpu

# ----------------------- model hyper-parameters -----------------------
BATCH = 2
NUM_NODES = 16
INPUT_DIM = 2
RNN_UNITS = 32
PRE_K = 3
PRE_V = 2
MAX_DIFFUSION_STEP = 2
NUM_RNN_LAYERS = 2
SEQ_LEN = 8  # unused in forward (kept for parity with the PyTorch __init__)

NUM_MATRICES = MAX_DIFFUSION_STEP + 1           # single "laplacian" support
GCONV_F = RNN_UNITS * (1 + PRE_V)               # per-node gconv input size (input + preH)


# ----------------------- host-side glue (init-time) -----------------------
def calculate_scaled_laplacian(adj_mx, lambda_max=None):
    """Scaled Laplacian 2L/lambda_max - I (matches DCRNN/GMSDR utils)."""
    adj = np.maximum(adj_mx, adj_mx.T)
    d = adj.sum(axis=1)
    d_inv_sqrt = np.zeros_like(d)
    nz = d > 0
    d_inv_sqrt[nz] = d[nz] ** -0.5
    n = adj.shape[0]
    lap = np.eye(n) - (d_inv_sqrt[:, None] * adj) * d_inv_sqrt[None, :]
    if lambda_max is None:
        lambda_max = float(np.linalg.eigvalsh(lap).max())
    return ((2.0 / lambda_max) * lap - np.eye(n)).astype(np.float32)


# ----------------------- fused Pallas kernel -----------------------
def _encoder_kernel(x_ref, hxk_ref, sup_ref, mlpw_ref, mlpb_ref,
                    wg_ref, bg_ref, w_ref, b_ref, r_ref, wa_ref, ba_ref,
                    out_ref, newhx_ref, *,
                    num_layers, pre_k, pre_v, max_diffusion_step):
    # One grid step == one batch element.  Blocks:
    #   x_ref     : (1, N, Cin)          hxk_ref  : (L, 1, K, N, D)
    #   sup_ref   : (N, N)               weights  : full per-layer stacks
    #   out_ref   : (1, N, D)            newhx_ref: (L, 1, K, N, D)
    sup = sup_ref[...]                                            # (N, N)

    # ---- input MLP: Linear(input_dim -> rnn_units) ----
    h = jnp.dot(x_ref[0], mlpw_ref[...],
                preferred_element_type=jnp.float32) + mlpb_ref[...]   # (N, D)

    for l in range(num_layers):                                   # static unroll (L=2)
        hxk = hxk_ref[l, 0]                                       # (K, N, D)

        # preH: newest pre_v hidden states, newest first (matches the reference
        # loop: preH = hx_k[:, -1:]; cat(hx_k[:, -(i+1):-i], dim=-1)).
        feats = [h] + [hxk[pre_k - 1 - i] for i in range(pre_v)]
        xc = jnp.concatenate(feats, axis=-1)                      # (N, F)

        # Chebyshev diffusion: T0 = x, T1 = L x, Tk = 2 L T(k-1) - T(k-2).
        # One 2-D MXU matmul per order; no per-batch loop, no stack copies.
        cheb = [xc]
        if max_diffusion_step > 0:
            t1 = jnp.dot(sup, xc, preferred_element_type=jnp.float32)
            cheb.append(t1)
            tkm2, tkm1 = xc, t1
            for _ in range(2, max_diffusion_step + 1):
                tk = 2.0 * jnp.dot(sup, tkm1,
                                   preferred_element_type=jnp.float32) - tkm2
                cheb.append(tk)
                tkm2, tkm1 = tkm1, tk

        # gconv: single MXU push over all orders (contraction = num_matrices*F).
        # Weight rows are ordered [order0 features | order1 | order2]; this is
        # the PyTorch (F*num_matrices, D) weight up to a fixed row permutation
        # (weights are initialized here, so the parametrization is equivalent).
        xall = jnp.concatenate(cheb, axis=-1)                     # (N, M*F)
        g = jnp.dot(xall, wg_ref[l],
                    preferred_element_type=jnp.float32) + bg_ref[l]   # bias_start=1.0
        conv = jnp.where(g >= 0.0, g, 0.01 * g)                   # leaky_relu (0.01)

        # Attention over the pre_k states of new_states = hx_k + R.
        new_states = hxk + r_ref[l]                               # (K, N, D)
        s_nd = jnp.sum(new_states * wa_ref[l][None], axis=2)      # (K, N)  lane reduce
        scores = jnp.sum(s_nd, axis=1, keepdims=True) + ba_ref[l] # (K, 1)
        smax = jnp.max(scores, axis=0, keepdims=True)
        e = jnp.exp(scores - smax)
        wgt = e / jnp.sum(e, axis=0, keepdims=True)               # softmax over pre_k
        att = jnp.sum(new_states * wgt[:, :, None], axis=0)       # (N, D)

        # Output projection.
        out_l = (jnp.dot(conv, w_ref[l], preferred_element_type=jnp.float32)
                 + b_ref[l] + att)                                # (N, D)

        # hx_k shift/update: direct slice stores (plain VMEM copies, no concat
        # / relayout on the K axis).
        newhx_ref[l, 0, :pre_k - 1] = hxk[1:]
        newhx_ref[l, 0, pre_k - 1] = out_l
        h = out_l                                                 # feed next layer

    out_ref[0] = h


# ----------------------- pallas_call wrapper -----------------------
def _encoder_forward(inputs, hx_k, support, params):
    """inputs: (B, N*input_dim); hx_k: (L, B, pre_k, N, D).
    Returns (output (B, N*D), new hx_k (L, B, pre_k, N, D))."""
    B = inputs.shape[0]
    L, K, N, D = NUM_RNN_LAYERS, PRE_K, NUM_NODES, RNN_UNITS
    x = inputs.reshape(B, N, INPUT_DIM)

    kern = functools.partial(_encoder_kernel, num_layers=L, pre_k=K,
                             pre_v=PRE_V, max_diffusion_step=MAX_DIFFUSION_STEP)

    def full(shape):  # whole-array block, re-used (not re-fetched) every grid step
        return pl.BlockSpec(shape, lambda i, _s=shape: (0,) * len(_s))

    out, new_hx = pl.pallas_call(
        kern,
        grid=(B,),
        out_shape=(jax.ShapeDtypeStruct((B, N, D), jnp.float32),
                   jax.ShapeDtypeStruct((L, B, K, N, D), jnp.float32)),
        in_specs=[
            pl.BlockSpec((1, N, INPUT_DIM), lambda i: (i, 0, 0)),       # x
            pl.BlockSpec((L, 1, K, N, D), lambda i: (0, i, 0, 0, 0)),   # hx_k
            full((N, N)),                                               # support
            full((INPUT_DIM, D)), full((1, D)),                         # mlp w, b
            full((L, NUM_MATRICES * GCONV_F, D)), full((L, 1, D)),      # wg, bg
            full((L, D, D)), full((L, N, D)),                           # W, b
            full((L, K, N, D)), full((L, N, D)), full((L, 1, 1)),       # R, wa, ba
        ],
        out_specs=(
            pl.BlockSpec((1, N, D), lambda i: (i, 0, 0)),               # output
            pl.BlockSpec((L, 1, K, N, D), lambda i: (0, i, 0, 0, 0)),   # new hx_k
        ),
        # hx_k -> new hx_k: true in-place state update when the caller donates.
        input_output_aliases={1: 1},
        compiler_params=pltpu.CompilerParams(
            dimension_semantics=("parallel",)),                         # v7x: 2 TCs
    )(x, hx_k, support,
      params["mlp_w"], params["mlp_b"], params["wg"], params["bg"],
      params["W"], params["b"], params["R"], params["wa"], params["ba"])

    return out.reshape(B, N * D), new_hx


encoder_forward = jax.jit(_encoder_forward)


# ----------------------- deterministic parameter init -----------------------
def init_params(key):
    ks = jax.random.split(key, 8)
    L, K, N, D = NUM_RNN_LAYERS, PRE_K, NUM_NODES, RNN_UNITS
    return {
        "mlp_w": 0.1 * jax.random.normal(ks[0], (INPUT_DIM, D), jnp.float32),
        "mlp_b": 0.1 * jax.random.normal(ks[1], (1, D), jnp.float32),
        # gconv weight: (L, num_matrices * F, D), Chebyshev orders stacked on rows.
        "wg": 0.1 * jax.random.normal(ks[2], (L, NUM_MATRICES * GCONV_F, D), jnp.float32),
        "bg": jnp.full((L, 1, D), 1.0, jnp.float32),        # bias_start = 1.0
        "W": 0.1 * jax.random.normal(ks[3], (L, D, D), jnp.float32),
        "b": 0.1 * jax.random.normal(ks[4], (L, N, D), jnp.float32),
        "R": 0.1 * jax.random.normal(ks[5], (L, K, N, D), jnp.float32),
        # attlinear weight (1, N*D) stored reshaped as (N, D); bias (1, 1).
        "wa": 0.1 * jax.random.normal(ks[6], (L, N, D), jnp.float32),
        "ba": jnp.zeros((L, 1, 1), jnp.float32),
    }


# ----------------------- main -----------------------
if __name__ == "__main__":
    key = jax.random.PRNGKey(0)
    k_in, k_hx, k_par, k_adj = jax.random.split(key, 4)

    # deterministic synthetic adjacency -> scaled Laplacian support (init-time const)
    adj = np.asarray(jax.random.uniform(k_adj, (NUM_NODES, NUM_NODES)), dtype=np.float32)
    adj = (adj > 0.5).astype(np.float32)
    np.fill_diagonal(adj, 1.0)
    support = jnp.asarray(calculate_scaled_laplacian(adj), jnp.float32)

    params = init_params(k_par)
    inputs = jax.random.normal(k_in, (BATCH, NUM_NODES * INPUT_DIM), jnp.float32)
    hx_k = jax.random.normal(
        k_hx, (NUM_RNN_LAYERS, BATCH, PRE_K, NUM_NODES, RNN_UNITS), jnp.float32)

    output, new_hx_k = encoder_forward(inputs, hx_k, support, params)
    jax.block_until_ready((output, new_hx_k))

    assert output.shape == (BATCH, NUM_NODES * RNN_UNITS)
    assert new_hx_k.shape == (NUM_RNN_LAYERS, BATCH, PRE_K, NUM_NODES, RNN_UNITS)
    assert bool(jnp.all(jnp.isfinite(output))) and bool(jnp.all(jnp.isfinite(new_hx_k)))
    print("KERNEL_OK")
</pallas_src>

<mosaic_0001>
module attributes {stable_mosaic.version = 11 : i64} {
  func.func @_encoder_kernel(%arg0: i32, %arg1: memref<1x16x2xf32, #tpu.memory_space<vmem>>, %arg2: memref<2x1x3x16x32xf32, #tpu.memory_space<vmem>>, %arg3: memref<16x16xf32, #tpu.memory_space<vmem>>, %arg4: memref<2x32xf32, #tpu.memory_space<vmem>>, %arg5: memref<1x32xf32, #tpu.memory_space<vmem>>, %arg6: memref<2x288x32xf32, #tpu.memory_space<vmem>>, %arg7: memref<2x1x32xf32, #tpu.memory_space<vmem>>, %arg8: memref<2x32x32xf32, #tpu.memory_space<vmem>>, %arg9: memref<2x16x32xf32, #tpu.memory_space<vmem>>, %arg10: memref<2x3x16x32xf32, #tpu.memory_space<vmem>>, %arg11: memref<2x16x32xf32, #tpu.memory_space<vmem>>, %arg12: memref<2x1x1xf32, #tpu.memory_space<vmem>>, %arg13: memref<1x16x32xf32, #tpu.memory_space<vmem>>, %arg14: memref<2x1x3x16x32xf32, #tpu.memory_space<vmem>>) attributes {dimension_semantics = [#tpu.dimension_semantics<parallel>], iteration_bounds = array<i64: 2>, scalar_prefetch = 0 : i64, scratch_operands = 0 : i64, tpu.core_type = #tpu.core_type<tc>, window_params = [{transform_indices = @transform_0, window_bounds = array<i64: 1, 16, 2>}, {transform_indices = @transform_1, window_bounds = array<i64: 2, 1, 3, 16, 32>}, {pipeline_mode = #tpu.pipeline_mode<synchronous>, transform_indices = @transform_2, window_bounds = array<i64: 16, 16>}, {pipeline_mode = #tpu.pipeline_mode<synchronous>, transform_indices = @transform_3, window_bounds = array<i64: 2, 32>}, {pipeline_mode = #tpu.pipeline_mode<synchronous>, transform_indices = @transform_4, window_bounds = array<i64: 1, 32>}, {pipeline_mode = #tpu.pipeline_mode<synchronous>, transform_indices = @transform_5, window_bounds = array<i64: 2, 288, 32>}, {pipeline_mode = #tpu.pipeline_mode<synchronous>, transform_indices = @transform_6, window_bounds = array<i64: 2, 1, 32>}, {pipeline_mode = #tpu.pipeline_mode<synchronous>, transform_indices = @transform_7, window_bounds = array<i64: 2, 32, 32>}, {pipeline_mode = #tpu.pipeline_mode<synchronous>, transform_indices = @transform_8, window_bounds = array<i64: 2, 16, 32>}, {pipeline_mode = #tpu.pipeline_mode<synchronous>, transform_indices = @transform_9, window_bounds = array<i64: 2, 3, 16, 32>}, {pipeline_mode = #tpu.pipeline_mode<synchronous>, transform_indices = @transform_10, window_bounds = array<i64: 2, 16, 32>}, {pipeline_mode = #tpu.pipeline_mode<synchronous>, transform_indices = @transform_11, window_bounds = array<i64: 2, 1, 1>}, {transform_indices = @transform_12, window_bounds = array<i64: 1, 16, 32>}, {transform_indices = @transform_13, window_bounds = array<i64: 2, 1, 3, 16, 32>}]} {
    %c0 = arith.constant 0 : index
    %c0_0 = arith.constant 0 : index
    %0 = vector.load %arg3[%c0, %c0_0] : memref<16x16xf32, #tpu.memory_space<vmem>>, vector<16x16xf32>
    %c0_1 = arith.constant 0 : index
    %c0_2 = arith.constant 0 : index
    %c0_3 = arith.constant 0 : index
    %1 = vector.load %arg1[%c0_1, %c0_2, %c0_3] : memref<1x16x2xf32, #tpu.memory_space<vmem>>, vector<1x16x2xf32>
    %2 = vector.shape_cast %1 : vector<1x16x2xf32> to vector<16x2xf32>
    %c0_4 = arith.constant 0 : index
    %c0_5 = arith.constant 0 : index
    %3 = vector.load %arg4[%c0_4, %c0_5] : memref<2x32xf32, #tpu.memory_space<vmem>>, vector<2x32xf32>
    %cst = arith.constant dense<0.000000e+00> : vector<16x32xf32>
    %4 = tpu.matmul %2, %3, %cst {dimension_numbers = #tpu.dot_dimension_numbers<[1], [0], [0], [1], [0, 0, 1, 1], [], []>} : vector<16x2xf32>, vector<2x32xf32>, vector<16x32xf32> -> vector<16x32xf32>
    %c0_6 = arith.constant 0 : index
    %c0_7 = arith.constant 0 : index
    %5 = vector.load %arg5[%c0_6, %c0_7] : memref<1x32xf32, #tpu.memory_space<vmem>>, vector<1x32xf32>
    %6 = vector.broadcast %5 : vector<1x32xf32> to vector<16x32xf32>
    %7 = arith.addf %4, %6 : vector<16x32xf32>
    %c0_8 = arith.constant 0 : index
    %c0_9 = arith.constant 0 : index
    %c0_10 = arith.constant 0 : index
    %c0_11 = arith.constant 0 : index
    %c0_12 = arith.constant 0 : index
    %8 = vector.load %arg2[%c0_8, %c0_9, %c0_10, %c0_11, %c0_12] : memref<2x1x3x16x32xf32, #tpu.memory_space<vmem>>, vector<1x1x3x16x32xf32>
    %9 = vector.shape_cast %8 : vector<1x1x3x16x32xf32> to vector<3x16x32xf32>
    %10 = vector.extract_strided_slice %9 {offsets = [2, 0, 0], sizes = [1, 16, 32], strides = [1, 1, 1]} : vector<3x16x32xf32> to vector<1x16x32xf32>
    %11 = vector.shape_cast %10 : vector<1x16x32xf32> to vector<16x32xf32>
    %12 = vector.extract_strided_slice %9 {offsets = [1, 0, 0], sizes = [1, 16, 32], strides = [1, 1, 1]} : vector<3x16x32xf32> to vector<1x16x32xf32>
    %13 = vector.shape_cast %12 : vector<1x16x32xf32> to vector<16x32xf32>
    %14 = tpu.concatenate %7, %11, %13 in 1 : vector<16x32xf32>, vector<16x32xf32>, vector<16x32xf32> -> vector<16x96xf32>
    %cst_13 = arith.constant dense<0.000000e+00> : vector<16x96xf32>
    %15 = tpu.matmul %0, %14, %cst_13 {dimension_numbers = #tpu.dot_dimension_numbers<[1], [0], [0], [1], [0, 0, 1, 1], [], []>} : vector<16x16xf32>, vector<16x96xf32>, vector<16x96xf32> -> vector<16x96xf32>
    %cst_14 = arith.constant dense<0.000000e+00> : vector<16x96xf32>
    %16 = tpu.matmul %0, %15, %cst_14 {dimension_numbers = #tpu.dot_dimension_numbers<[1], [0], [0], [1], [0, 0, 1, 1], [], []>} : vector<16x16xf32>, vector<16x96xf32>, vector<16x96xf32> -> vector<16x96xf32>
    %cst_15 = arith.constant 2.000000e+00 : f32
    %17 = vector.broadcast %cst_15 : f32 to vector<16x96xf32>
    %18 = arith.mulf %17, %16 : vector<16x96xf32>
    %19 = arith.subf %18, %14 : vector<16x96xf32>
    %20 = tpu.concatenate %14, %15, %19 in 1 : vector<16x96xf32>, vector<16x96xf32>, vector<16x96xf32> -> vector<16x288xf32>
    %c0_16 = arith.constant 0 : index
    %c0_17 = arith.constant 0 : index
    %c0_18 = arith.constant 0 : index
    %21 = vector.load %arg6[%c0_16, %c0_17, %c0_18] : memref<2x288x32xf32, #tpu.memory_space<vmem>>, vector<1x288x32xf32>
    %22 = vector.shape_cast %21 : vector<1x288x32xf32> to vector<288x32xf32>
    %cst_19 = arith.constant dense<0.000000e+00> : vector<16x32xf32>
    %23 = tpu.matmul %20, %22, %cst_19 {dimension_numbers = #tpu.dot_dimension_numbers<[1], [0], [0], [1], [0, 0, 1, 1], [], []>} : vector<16x288xf32>, vector<288x32xf32>, vector<16x32xf32> -> vector<16x32xf32>
    %c0_20 = arith.constant 0 : index
    %c0_21 = arith.constant 0 : index
    %c0_22 = arith.constant 0 : index
    %24 = vector.load %arg7[%c0_20, %c0_21, %c0_22] : memref<2x1x32xf32, #tpu.memory_space<vmem>>, vector<1x1x32xf32>
    %25 = vector.shape_cast %24 : vector<1x1x32xf32> to vector<1x32xf32>
    %26 = vector.broadcast %25 : vector<1x32xf32> to vector<16x32xf32>
    %27 = arith.addf %23, %26 : vector<16x32xf32>
    %cst_23 = arith.constant 0.000000e+00 : f32
    %28 = vector.broadcast %cst_23 : f32 to vector<16x32xf32>
    %29 = arith.cmpf oge, %27, %28 : vector<16x32xf32>
    %cst_24 = arith.constant 0.00999999977 : f32
    %30 = vector.broadcast %cst_24 : f32 to vector<16x32xf32>
    %31 = arith.mulf %30, %27 : vector<16x32xf32>
    %32 = arith.select %29, %27, %31 : vector<16x32xi1>, vector<16x32xf32>
    %c0_25 = arith.constant 0 : index
    %c0_26 = arith.constant 0 : index
    %c0_27 = arith.constant 0 : index
    %c0_28 = arith.constant 0 : index
    %33 = vector.load %arg10[%c0_25, %c0_26, %c0_27, %c0_28] : memref<2x3x16x32xf32, #tpu.memory_space<vmem>>, vector<1x3x16x32xf32>
    %34 = vector.shape_cast %33 : vector<1x3x16x32xf32> to vector<3x16x32xf32>
    %35 = arith.addf %9, %34 : vector<3x16x32xf32>
    %c0_29 = arith.constant 0 : index
    %c0_30 = arith.constant 0 : index
    %c0_31 = arith.constant 0 : index
    %36 = vector.load %arg11[%c0_29, %c0_30, %c0_31] : memref<2x16x32xf32, #tpu.memory_space<vmem>>, vector<1x16x32xf32>
    %37 = vector.shape_cast %36 : vector<1x16x32xf32> to vector<16x32xf32>
    %38 = vector.shape_cast %37 : vector<16x32xf32> to vector<1x16x32xf32>
    %39 = vector.broadcast %38 : vector<1x16x32xf32> to vector<3x16x32xf32>
    %40 = arith.mulf %35, %39 : vector<3x16x32xf32>
    %cst_32 = arith.constant dense<0.000000e+00> : vector<3x16xf32>
    %41 = vector.multi_reduction <add>, %40, %cst_32 [2] : vector<3x16x32xf32> to vector<3x16xf32>
    %cst_33 = arith.constant dense<0.000000e+00> : vector<3xf32>
    %42 = vector.multi_reduction <add>, %41, %cst_33 [1] : vector<3x16xf32> to vector<3xf32>
    %43 = vector.shape_cast %42 : vector<3xf32> to vector<3x1xf32>
    %c0_34 = arith.constant 0 : index
    %c0_35 = arith.constant 0 : index
    %c0_36 = arith.constant 0 : index
    %44 = vector.load %arg12[%c0_34, %c0_35, %c0_36] : memref<2x1x1xf32, #tpu.memory_space<vmem>>, vector<1x1x1xf32>
    %45 = vector.shape_cast %44 : vector<1x1x1xf32> to vector<1x1xf32>
    %46 = vector.broadcast %45 : vector<1x1xf32> to vector<3x1xf32>
    %47 = arith.addf %43, %46 : vector<3x1xf32>
    %cst_37 = arith.constant dense<0xFF800000> : vector<1xf32>
    %48 = vector.multi_reduction <maximumf>, %47, %cst_37 [0] : vector<3x1xf32> to vector<1xf32>
    %49 = vector.shape_cast %48 : vector<1xf32> to vector<1x1xf32>
    %50 = vector.broadcast %49 : vector<1x1xf32> to vector<3x1xf32>
    %51 = arith.subf %47, %50 : vector<3x1xf32>
    %52 = math.exp %51 : vector<3x1xf32>
    %cst_38 = arith.constant dense<0.000000e+00> : vector<1xf32>
    %53 = vector.multi_reduction <add>, %52, %cst_38 [0] : vector<3x1xf32> to vector<1xf32>
    %54 = vector.shape_cast %53 : vector<1xf32> to vector<1x1xf32>
    %55 = vector.broadcast %54 : vector<1x1xf32> to vector<3x1xf32>
    %56 = arith.divf %52, %55 : vector<3x1xf32>
    %57 = vector.shape_cast %56 : vector<3x1xf32> to vector<3x1x1xf32>
    %58 = vector.broadcast %57 : vector<3x1x1xf32> to vector<3x16x32xf32>
    %59 = arith.mulf %35, %58 : vector<3x16x32xf32>
    %cst_39 = arith.constant dense<0.000000e+00> : vector<16x32xf32>
    %60 = vector.multi_reduction <add>, %59, %cst_39 [0] : vector<3x16x32xf32> to vector<16x32xf32>
    %c0_40 = arith.constant 0 : index
    %c0_41 = arith.constant 0 : index
    %c0_42 = arith.constant 0 : index
    %61 = vector.load %arg8[%c0_40, %c0_41, %c0_42] : memref<2x32x32xf32, #tpu.memory_space<vmem>>, vector<1x32x32xf32>
    %62 = vector.shape_cast %61 : vector<1x32x32xf32> to vector<32x32xf32>
    %cst_43 = arith.constant dense<0.000000e+00> : vector<16x32xf32>
    %63 = tpu.matmul %32, %62, %cst_43 {dimension_numbers = #tpu.dot_dimension_numbers<[1], [0], [0], [1], [0, 0, 1, 1], [], []>} : vector<16x32xf32>, vector<32x32xf32>, vector<16x32xf32> -> vector<16x32xf32>
    %c0_44 = arith.constant 0 : index
    %c0_45 = arith.constant 0 : index
    %c0_46 = arith.constant 0 : index
    %64 = vector.load %arg9[%c0_44, %c0_45, %c0_46] : memref<2x16x32xf32, #tpu.memory_space<vmem>>, vector<1x16x32xf32>
    %65 = vector.shape_cast %64 : vector<1x16x32xf32> to vector<16x32xf32>
    %66 = arith.addf %63, %65 : vector<16x32xf32>
    %67 = arith.addf %66, %60 : vector<16x32xf32>
    %68 = vector.extract_strided_slice %9 {offsets = [1, 0, 0], sizes = [2, 16, 32], strides = [1, 1, 1]} : vector<3x16x32xf32> to vector<2x16x32xf32>
    %c0_47 = arith.constant 0 : index
    %c0_48 = arith.constant 0 : index
    %c0_49 = arith.constant 0 : index
    %c0_50 = arith.constant 0 : index
    %c0_51 = arith.constant 0 : index
    %69 = vector.load %arg14[%c0_47, %c0_48, %c0_49, %c0_50, %c0_51] : memref<2x1x3x16x32xf32, #tpu.memory_space<vmem>>, vector<1x1x2x16x32xf32>
    %70 = vector.shape_cast %69 : vector<1x1x2x16x32xf32> to vector<2x16x32xf32>
    %71 = vector.shape_cast %68 : vector<2x16x32xf32> to vector<1x1x2x16x32xf32>
    tpu.vector_store %arg14[%c0_47, %c0_48, %c0_49, %c0_50, %c0_51], %71 {strides = array<i32>} : memref<2x1x3x16x32xf32, #tpu.memory_space<vmem>>, vector<1x1x2x16x32xf32>,
    %c0_52 = arith.constant 0 : index
    %c0_53 = arith.constant 0 : index
    %c2 = arith.constant 2 : index
    %c0_54 = arith.constant 0 : index
    %c0_55 = arith.constant 0 : index
    %72 = vector.load %arg14[%c0_52, %c0_53, %c2, %c0_54, %c0_55] : memref<2x1x3x16x32xf32, #tpu.memory_space<vmem>>, vector<1x1x1x16x32xf32>
    %73 = vector.shape_cast %72 : vector<1x1x1x16x32xf32> to vector<16x32xf32>
    %74 = vector.shape_cast %67 : vector<16x32xf32> to vector<1x1x1x16x32xf32>
    tpu.vector_store %arg14[%c0_52, %c0_53, %c2, %c0_54, %c0_55], %74 {strides = array<i32>} : memref<2x1x3x16x32xf32, #tpu.memory_space<vmem>>, vector<1x1x1x16x32xf32>,
    %c1 = arith.constant 1 : index
    %c0_56 = arith.constant 0 : index
    %c0_57 = arith.constant 0 : index
    %c0_58 = arith.constant 0 : index
    %c0_59 = arith.constant 0 : index
    %75 = vector.load %arg2[%c1, %c0_56, %c0_57, %c0_58, %c0_59] : memref<2x1x3x16x32xf32, #tpu.memory_space<vmem>>, vector<1x1x3x16x32xf32>
    %76 = vector.shape_cast %75 : vector<1x1x3x16x32xf32> to vector<3x16x32xf32>
    %77 = vector.extract_strided_slice %76 {offsets = [2, 0, 0], sizes = [1, 16, 32], strides = [1, 1, 1]} : vector<3x16x32xf32> to vector<1x16x32xf32>
    %78 = vector.shape_cast %77 : vector<1x16x32xf32> to vector<16x32xf32>
    %79 = vector.extract_strided_slice %76 {offsets = [1, 0, 0], sizes = [1, 16, 32], strides = [1, 1, 1]} : vector<3x16x32xf32> to vector<1x16x32xf32>
    %80 = vector.shape_cast %79 : vector<1x16x32xf32> to vector<16x32xf32>
    %81 = tpu.concatenate %67, %78, %80 in 1 : vector<16x32xf32>, vector<16x32xf32>, vector<16x32xf32> -> vector<16x96xf32>
    %cst_60 = arith.constant dense<0.000000e+00> : vector<16x96xf32>
    %82 = tpu.matmul %0, %81, %cst_60 {dimension_numbers = #tpu.dot_dimension_numbers<[1], [0], [0], [1], [0, 0, 1, 1], [], []>} : vector<16x16xf32>, vector<16x96xf32>, vector<16x96xf32> -> vector<16x96xf32>
    %cst_61 = arith.constant dense<0.000000e+00> : vector<16x96xf32>
    %83 = tpu.matmul %0, %82, %cst_61 {dimension_numbers = #tpu.dot_dimension_numbers<[1], [0], [0], [1], [0, 0, 1, 1], [], []>} : vector<16x16xf32>, vector<16x96xf32>, vector<16x96xf32> -> vector<16x96xf32>
    %cst_62 = arith.constant 2.000000e+00 : f32
    %84 = vector.broadcast %cst_62 : f32 to vector<16x96xf32>
    %85 = arith.mulf %84, %83 : vector<16x96xf32>
    %86 = arith.subf %85, %81 : vector<16x96xf32>
    %87 = tpu.concatenate %81, %82, %86 in 1 : vector<16x96xf32>, vector<16x96xf32>, vector<16x96xf32> -> vector<16x288xf32>
    %c1_63 = arith.constant 1 : index
    %c0_64 = arith.constant 0 : index
    %c0_65 = arith.constant 0 : index
    %88 = vector.load %arg6[%c1_63, %c0_64, %c0_65] : memref<2x288x32xf32, #tpu.memory_space<vmem>>, vector<1x288x32xf32>
    %89 = vector.shape_cast %88 : vector<1x288x32xf32> to vector<288x32xf32>
    %cst_66 = arith.constant dense<0.000000e+00> : vector<16x32xf32>
    %90 = tpu.matmul %87, %89, %cst_66 {dimension_numbers = #tpu.dot_dimension_numbers<[1], [0], [0], [1], [0, 0, 1, 1], [], []>} : vector<16x288xf32>, vector<288x32xf32>, vector<16x32xf32> -> vector<16x32xf32>
    %c1_67 = arith.constant 1 : index
    %c0_68 = arith.constant 0 : index
    %c0_69 = arith.constant 0 : index
    %91 = vector.load %arg7[%c1_67, %c0_68, %c0_69] : memref<2x1x32xf32, #tpu.memory_space<vmem>>, vector<1x1x32xf32>
    %92 = vector.shape_cast %91 : vector<1x1x32xf32> to vector<1x32xf32>
    %93 = vector.broadcast %92 : vector<1x32xf32> to vector<16x32xf32>
    %94 = arith.addf %90, %93 : vector<16x32xf32>
    %cst_70 = arith.constant 0.000000e+00 : f32
    %95 = vector.broadcast %cst_70 : f32 to vector<16x32xf32>
    %96 = arith.cmpf oge, %94, %95 : vector<16x32xf32>
    %cst_71 = arith.constant 0.00999999977 : f32
    %97 = vector.broadcast %cst_71 : f32 to vector<16x32xf32>
    %98 = arith.mulf %97, %94 : vector<16x32xf32>
    %99 = arith.select %96, %94, %98 : vector<16x32xi1>, vector<16x32xf32>
    %c1_72 = arith.constant 1 : index
    %c0_73 = arith.constant 0 : index
    %c0_74 = arith.constant 0 : index
    %c0_75 = arith.constant 0 : index
    %100 = vector.load %arg10[%c1_72, %c0_73, %c0_74, %c0_75] : memref<2x3x16x32xf32, #tpu.memory_space<vmem>>, vector<1x3x16x32xf32>
    %101 = vector.shape_cast %100 : vector<1x3x16x32xf32> to vector<3x16x32xf32>
    %102 = arith.addf %76, %101 : vector<3x16x32xf32>
    %c1_76 = arith.constant 1 : index
    %c0_77 = arith.constant 0 : index
    %c0_78 = arith.constant 0 : index
    %103 = vector.load %arg11[%c1_76, %c0_77, %c0_78] : memref<2x16x32xf32, #tpu.memory_space<vmem>>, vector<1x16x32xf32>
    %104 = vector.shape_cast %103 : vector<1x16x32xf32> to vector<16x32xf32>
    %105 = vector.shape_cast %104 : vector<16x32xf32> to vector<1x16x32xf32>
    %106 = vector.broadcast %105 : vector<1x16x32xf32> to vector<3x16x32xf32>
    %107 = arith.mulf %102, %106 : vector<3x16x32xf32>
    %cst_79 = arith.constant dense<0.000000e+00> : vector<3x16xf32>
    %108 = vector.multi_reduction <add>, %107, %cst_79 [2] : vector<3x16x32xf32> to vector<3x16xf32>
    %cst_80 = arith.constant dense<0.000000e+00> : vector<3xf32>
    %109 = vector.multi_reduction <add>, %108, %cst_80 [1] : vector<3x16xf32> to vector<3xf32>
    %110 = vector.shape_cast %109 : vector<3xf32> to vector<3x1xf32>
    %c1_81 = arith.constant 1 : index
    %c0_82 = arith.constant 0 : index
    %c0_83 = arith.constant 0 : index
    %111 = vector.load %arg12[%c1_81, %c0_82, %c0_83] : memref<2x1x1xf32, #tpu.memory_space<vmem>>, vector<1x1x1xf32>
    %112 = vector.shape_cast %111 : vector<1x1x1xf32> to vector<1x1xf32>
    %113 = vector.broadcast %112 : vector<1x1xf32> to vector<3x1xf32>
    %114 = arith.addf %110, %113 : vector<3x1xf32>
    %cst_84 = arith.constant dense<0xFF800000> : vector<1xf32>
    %115 = vector.multi_reduction <maximumf>, %114, %cst_84 [0] : vector<3x1xf32> to vector<1xf32>
    %116 = vector.shape_cast %115 : vector<1xf32> to vector<1x1xf32>
    %117 = vector.broadcast %116 : vector<1x1xf32> to vector<3x1xf32>
    %118 = arith.subf %114, %117 : vector<3x1xf32>
    %119 = math.exp %118 : vector<3x1xf32>
    %cst_85 = arith.constant dense<0.000000e+00> : vector<1xf32>
    %120 = vector.multi_reduction <add>, %119, %cst_85 [0] : vector<3x1xf32> to vector<1xf32>
    %121 = vector.shape_cast %120 : vector<1xf32> to vector<1x1xf32>
    %122 = vector.broadcast %121 : vector<1x1xf32> to vector<3x1xf32>
    %123 = arith.divf %119, %122 : vector<3x1xf32>
    %124 = vector.shape_cast %123 : vector<3x1xf32> to vector<3x1x1xf32>
    %125 = vector.broadcast %124 : vector<3x1x1xf32> to vector<3x16x32xf32>
    %126 = arith.mulf %102, %125 : vector<3x16x32xf32>
    %cst_86 = arith.constant dense<0.000000e+00> : vector<16x32xf32>
    %127 = vector.multi_reduction <add>, %126, %cst_86 [0] : vector<3x16x32xf32> to vector<16x32xf32>
    %c1_87 = arith.constant 1 : index
    %c0_88 = arith.constant 0 : index
    %c0_89 = arith.constant 0 : index
    %128 = vector.load %arg8[%c1_87, %c0_88, %c0_89] : memref<2x32x32xf32, #tpu.memory_space<vmem>>, vector<1x32x32xf32>
    %129 = vector.shape_cast %128 : vector<1x32x32xf32> to vector<32x32xf32>
    %cst_90 = arith.constant dense<0.000000e+00> : vector<16x32xf32>
    %130 = tpu.matmul %99, %129, %cst_90 {dimension_numbers = #tpu.dot_dimension_numbers<[1], [0], [0], [1], [0, 0, 1, 1], [], []>} : vector<16x32xf32>, vector<32x32xf32>, vector<16x32xf32> -> vector<16x32xf32>
    %c1_91 = arith.constant 1 : index
    %c0_92 = arith.constant 0 : index
    %c0_93 = arith.constant 0 : index
    %131 = vector.load %arg9[%c1_91, %c0_92, %c0_93] : memref<2x16x32xf32, #tpu.memory_space<vmem>>, vector<1x16x32xf32>
    %132 = vector.shape_cast %131 : vector<1x16x32xf32> to vector<16x32xf32>
    %133 = arith.addf %130, %132 : vector<16x32xf32>
    %134 = arith.addf %133, %127 : vector<16x32xf32>
    %135 = vector.extract_strided_slice %76 {offsets = [1, 0, 0], sizes = [2, 16, 32], strides = [1, 1, 1]} : vector<3x16x32xf32> to vector<2x16x32xf32>
    %c1_94 = arith.constant 1 : index
    %c0_95 = arith.constant 0 : index
    %c0_96 = arith.constant 0 : index
    %c0_97 = arith.constant 0 : index
    %c0_98 = arith.constant 0 : index
    %136 = vector.load %arg14[%c1_94, %c0_95, %c0_96, %c0_97, %c0_98] : memref<2x1x3x16x32xf32, #tpu.memory_space<vmem>>, vector<1x1x2x16x32xf32>
    %137 = vector.shape_cast %136 : vector<1x1x2x16x32xf32> to vector<2x16x32xf32>
    %138 = vector.shape_cast %135 : vector<2x16x32xf32> to vector<1x1x2x16x32xf32>
    tpu.vector_store %arg14[%c1_94, %c0_95, %c0_96, %c0_97, %c0_98], %138 {strides = array<i32>} : memref<2x1x3x16x32xf32, #tpu.memory_space<vmem>>, vector<1x1x2x16x32xf32>,
    %c1_99 = arith.constant 1 : index
    %c0_100 = arith.constant 0 : index
    %c2_101 = arith.constant 2 : index
    %c0_102 = arith.constant 0 : index
    %c0_103 = arith.constant 0 : index
    %139 = vector.load %arg14[%c1_99, %c0_100, %c2_101, %c0_102, %c0_103] : memref<2x1x3x16x32xf32, #tpu.memory_space<vmem>>, vector<1x1x1x16x32xf32>
    %140 = vector.shape_cast %139 : vector<1x1x1x16x32xf32> to vector<16x32xf32>
    %141 = vector.shape_cast %134 : vector<16x32xf32> to vector<1x1x1x16x32xf32>
    tpu.vector_store %arg14[%c1_99, %c0_100, %c2_101, %c0_102, %c0_103], %141 {strides = array<i32>} : memref<2x1x3x16x32xf32, #tpu.memory_space<vmem>>, vector<1x1x1x16x32xf32>,
    %c0_104 = arith.constant 0 : index
    %c0_105 = arith.constant 0 : index
    %c0_106 = arith.constant 0 : index
    %142 = vector.load %arg13[%c0_104, %c0_105, %c0_106] : memref<1x16x32xf32, #tpu.memory_space<vmem>>, vector<1x16x32xf32>
    %143 = vector.shape_cast %142 : vector<1x16x32xf32> to vector<16x32xf32>
    %144 = vector.shape_cast %134 : vector<16x32xf32> to vector<1x16x32xf32>
    tpu.vector_store %arg13[%c0_104, %c0_105, %c0_106], %144 {strides = array<i32>} : memref<1x16x32xf32, #tpu.memory_space<vmem>>, vector<1x16x32xf32>,
    return
  }
  func.func @transform_0(%arg0: i32) -> (i32, i32, i32) {
    %c0_i32 = arith.constant 0 : i32
    %c0_i32_0 = arith.constant 0 : i32
    %c0_i32_1 = arith.constant 0 : i32
    return %arg0, %c0_i32, %c0_i32_0 : i32, i32, i32
  }
  func.func @transform_1(%arg0: i32) -> (i32, i32, i32, i32, i32) {
    %c0_i32 = arith.constant 0 : i32
    %c0_i32_0 = arith.constant 0 : i32
    %c0_i32_1 = arith.constant 0 : i32
    %c0_i32_2 = arith.constant 0 : i32
    %c0_i32_3 = arith.constant 0 : i32
    return %c0_i32, %arg0, %c0_i32_0, %c0_i32_1, %c0_i32_2 : i32, i32, i32, i32, i32
  }
  func.func @transform_2(%arg0: i32) -> (i32, i32) {
    %c0_i32 = arith.constant 0 : i32
    %c0_i32_0 = arith.constant 0 : i32
    %c0_i32_1 = arith.constant 0 : i32
    return %c0_i32, %c0_i32_0 : i32, i32
  }
  func.func @transform_3(%arg0: i32) -> (i32, i32) {
    %c0_i32 = arith.constant 0 : i32
    %c0_i32_0 = arith.constant 0 : i32
    %c0_i32_1 = arith.constant 0 : i32
    return %c0_i32, %c0_i32_0 : i32, i32
  }
  func.func @transform_4(%arg0: i32) -> (i32, i32) {
    %c0_i32 = arith.constant 0 : i32
    %c0_i32_0 = arith.constant 0 : i32
    %c0_i32_1 = arith.constant 0 : i32
    return %c0_i32, %c0_i32_0 : i32, i32
  }
  func.func @transform_5(%arg0: i32) -> (i32, i32, i32) {
    %c0_i32 = arith.constant 0 : i32
    %c0_i32_0 = arith.constant 0 : i32
    %c0_i32_1 = arith.constant 0 : i32
    %c0_i32_2 = arith.constant 0 : i32
    return %c0_i32, %c0_i32_0, %c0_i32_1 : i32, i32, i32
  }
  func.func @transform_6(%arg0: i32) -> (i32, i32, i32) {
    %c0_i32 = arith.constant 0 : i32
    %c0_i32_0 = arith.constant 0 : i32
    %c0_i32_1 = arith.constant 0 : i32
    %c0_i32_2 = arith.constant 0 : i32
    return %c0_i32, %c0_i32_0, %c0_i32_1 : i32, i32, i32
  }
  func.func @transform_7(%arg0: i32) -> (i32, i32, i32) {
    %c0_i32 = arith.constant 0 : i32
    %c0_i32_0 = arith.constant 0 : i32
    %c0_i32_1 = arith.constant 0 : i32
    %c0_i32_2 = arith.constant 0 : i32
    return %c0_i32, %c0_i32_0, %c0_i32_1 : i32, i32, i32
  }
  func.func @transform_8(%arg0: i32) -> (i32, i32, i32) {
    %c0_i32 = arith.constant 0 : i32
    %c0_i32_0 = arith.constant 0 : i32
    %c0_i32_1 = arith.constant 0 : i32
    %c0_i32_2 = arith.constant 0 : i32
    return %c0_i32, %c0_i32_0, %c0_i32_1 : i32, i32, i32
  }
  func.func @transform_9(%arg0: i32) -> (i32, i32, i32, i32) {
    %c0_i32 = arith.constant 0 : i32
    %c0_i32_0 = arith.constant 0 : i32
    %c0_i32_1 = arith.constant 0 : i32
    %c0_i32_2 = arith.constant 0 : i32
    %c0_i32_3 = arith.constant 0 : i32
    return %c0_i32, %c0_i32_0, %c0_i32_1, %c0_i32_2 : i32, i32, i32, i32
  }
  func.func @transform_10(%arg0: i32) -> (i32, i32, i32) {
    %c0_i32 = arith.constant 0 : i32
    %c0_i32_0 = arith.constant 0 : i32
    %c0_i32_1 = arith.constant 0 : i32
    %c0_i32_2 = arith.constant 0 : i32
    return %c0_i32, %c0_i32_0, %c0_i32_1 : i32, i32, i32
  }
  func.func @transform_11(%arg0: i32) -> (i32, i32, i32) {
    %c0_i32 = arith.constant 0 : i32
    %c0_i32_0 = arith.constant 0 : i32
    %c0_i32_1 = arith.constant 0 : i32
    %c0_i32_2 = arith.constant 0 : i32
    return %c0_i32, %c0_i32_0, %c0_i32_1 : i32, i32, i32
  }
  func.func @transform_12(%arg0: i32) -> (i32, i32, i32) {
    %c0_i32 = arith.constant 0 : i32
    %c0_i32_0 = arith.constant 0 : i32
    %c0_i32_1 = arith.constant 0 : i32
    return %arg0, %c0_i32, %c0_i32_0 : i32, i32, i32
  }
  func.func @transform_13(%arg0: i32) -> (i32, i32, i32, i32, i32) {
    %c0_i32 = arith.constant 0 : i32
    %c0_i32_0 = arith.constant 0 : i32
    %c0_i32_1 = arith.constant 0 : i32
    %c0_i32_2 = arith.constant 0 : i32
    %c0_i32_3 = arith.constant 0 : i32
    return %c0_i32, %arg0, %c0_i32_0, %c0_i32_1, %c0_i32_2 : i32, i32, i32, i32, i32
  }
}

</mosaic_0001>

<bundles_post_ra>
// kernel: _encoder_forward.1
= control target key start
LH: loop header
LB: loop body
LE: loop exit
PB: predicated region body
PF: predicated region fallthrough
CT: control target
= control target key end

     0   :  { %s2523_s0 = inlined_call_operand.vmem [shape: f32[2,16,2], index: 0, kind: input, shape index: {}]   ;;  %s2524_s1 = inlined_call_operand.vmem [shape: f32[2,2,3,16,32], index: 1, kind: input, shape index: {}, may-alias: {1,13}]   ;;  %s2525_s2 = inlined_call_operand.vmem [shape: f32[16,16], index: 2, kind: input, shape index: {}]   ;;  %s2526_s3 = inlined_call_operand.vmem [shape: f32[2,32], index: 3, kind: input, shape index: {}]   ;;  %s2527_s4 = inlined_call_operand.vmem [shape: f32[1,32], index: 4, kind: input, shape index: {}]   ;;  %s2528_s5 = inlined_call_operand.vmem [shape: f32[2,288,32], index: 5, kind: input, shape index: {}]   ;;  %s2529_s6 = inlined_call_operand.vmem [shape: f32[2,1,32], index: 6, kind: input, shape index: {}]   ;;  %s2530_s7 = inlined_call_operand.vmem [shape: f32[2,32,32], index: 7, kind: input, shape index: {}]   ;;  %s2531_s8 = inlined_call_operand.vmem [shape: f32[2,16,32], index: 8, kind: input, shape index: {}]   ;;  %s2532_s9 = inlined_call_operand.vmem [shape: f32[2,3,16,32], index: 9, kind: input, shape index: {}]   ;;  %s2533_s10 = inlined_call_operand.vmem [shape: f32[2,16,32], index: 10, kind: input, shape index: {}]   ;;  %s2534_s11 = inlined_call_operand.vmem [shape: f32[2,1,1], index: 11, kind: input, shape index: {}]   ;;  %s2535_s12 = inlined_call_operand.vmem [shape: f32[2,16,32], index: 12, kind: output, shape index: {0}]   ;;  %s2536_s13 = inlined_call_operand.vmem [shape: f32[2,2,3,16,32], index: 13, kind: output, shape index: {1}, may-alias: {1,13}]  }
   0x1   :  { %2544 = sst [smem:[#allocation4_spill]] %s2523_s0 }
   0x2   :  { %2545 = sst [smem:[#allocation5_spill]] %s2524_s1 }
   0x3   :  { %s1832_s25 = smov 0   ;;  %s1834_s26 = smov 0  }
   0x4   :  { %s1836_s27 = smov 0  }
   0x5 LB: > { %s1848_s28 = sadd.s32 4294967295, %s1756_s27   ;;  %s1851_s29 = sadd.s32 1, %s1756_s27   ;;  %s1756_s27 = sphi %s1836_s27, %s2555_s27   ;;  %s1752_s26 = sphi %s1834_s26, %s2554_s26   ;;  %s1748_s25 = sphi %s1832_s25, %s2553_s25  }
   0x6   : > { %s54_s30 = ssub.s32 %s1756_s27, %s1851_s29  ;;  %s57_s14 = sadd.s32 1, %s1752_s26 }
   0x7   : > { %p55_p0 = scmp.eq.s32.totalorder %s54_s30, 0  ;;  %p64_p1 = scmp.ne.s32.totalorder %s1752_s26, %s1748_s25 }
   0x8   : > { %p65_p2 = scmp.eq.s32.totalorder %s1756_s27, 0  ;;  %p330_p3 = scmp.eq.s32.totalorder %s1848_s28, 1 }
   0x9   : > { %s1861_s15 = scalar_select %p55_p0, %s1752_s26, %s57_s14  }
   0xa   : > { %p66_p4 = por %p65_p2, %p64_p1  ;;  %p1863_p5 = por %p330_p3, %p64_p1 }
   0xb   : > { %p1589_p6 = scmp.ge.s32.totalorder %s1756_s27, 2 }
   0xd   : > { %382 = sbr.rel (%p1589_p6) target bundleno = 39 (0x27), region = 56 }
  0x12   : > { %393 = sbr.rel (!%p66_p4) target bundleno = 39 (0x27), region = 64  ;;  %s395_s17 = sand.u32 (%p66_p4), 1, %s1752_s26  }
  0x13   : > { %s1687_s18 = smul.u32 (%p66_p4), 48, %s1756_s27  ;;  %s2547_s1 = sld [smem:[#allocation5_spill]] (%p66_p4) }
  0x14   : > { %s1686_s19 = smul.u32 (%p66_p4), 96, %s395_s17 }
  0x16   : > { %s397_s23 = scalar_lea.vmem (%p66_p4), [#allocation2], %s1686_s19 }
  0x19   : > { %s400_s22 = scalar_lea.vmem %s2547_s1, %s1687_s18 }
  0x1a   : > { %v451_v0 = vld [vmem:[%s400_s22] sm:$0xff]  ;;  %v453_v1 = vld [vmem:[%s400_s22 + $0x8] sm:$0xff]  ;;  %v455_v2 = vld [vmem:[%s400_s22 + $0x10] sm:$0xff] }
  0x1b   : > { %452 = vst [vmem:[%s397_s23] sm:$0xff] %v451_v0  ;;  %v457_v3 = vld [vmem:[%s400_s22 + $0x18] sm:$0xff]  ;;  %v459_v4 = vld [vmem:[%s400_s22 + $0x20] sm:$0xff]  ;;  %v461_v5 = vld [vmem:[%s400_s22 + $0x28] sm:$0xff] }
  0x1c   : > { %454 = vst [vmem:[%s397_s23 + $0x8] sm:$0xff] %v453_v1  ;;  %v463_v6 = vld [vmem:[%s400_s22 + $0x60] sm:$0xff]  ;;  %v465_v7 = vld [vmem:[%s400_s22 + $0x68] sm:$0xff]  ;;  %v467_v8 = vld [vmem:[%s400_s22 + $0x70] sm:$0xff] }
  0x1d   : > { %456 = vst [vmem:[%s397_s23 + $0x10] sm:$0xff] %v455_v2  ;;  %v469_v9 = vld [vmem:[%s400_s22 + $0x78] sm:$0xff]  ;;  %v471_v10 = vld [vmem:[%s400_s22 + $0x80] sm:$0xff]  ;;  %v473_v11 = vld [vmem:[%s400_s22 + $0x88] sm:$0xff] }
  0x1e   : > { %458 = vst [vmem:[%s397_s23 + $0x18] sm:$0xff] %v457_v3 }
  0x1f   : > { %460 = vst [vmem:[%s397_s23 + $0x20] sm:$0xff] %v459_v4 }
  0x20   : > { %462 = vst [vmem:[%s397_s23 + $0x28] sm:$0xff] %v461_v5 }
  0x21   : > { %464 = vst [vmem:[%s397_s23 + $0x30] sm:$0xff] %v463_v6 }
  0x22   : > { %466 = vst [vmem:[%s397_s23 + $0x38] sm:$0xff] %v465_v7 }
  0x23   : > { %468 = vst [vmem:[%s397_s23 + $0x40] sm:$0xff] %v467_v8 }
  0x24   : > { %470 = vst [vmem:[%s397_s23 + $0x48] sm:$0xff] %v469_v9 }
  0x25   : > { %472 = vst [vmem:[%s397_s23 + $0x50] sm:$0xff] %v471_v10 }
  0x26   : > { %474 = vst [vmem:[%s397_s23 + $0x58] sm:$0xff] %v473_v11 }
  0x27 PF: > { %p1591_p7 = scmp.ge.s32.totalorder %s1756_s27, 1  ;;  %p479_p8 = scmp.lt.s32.totalorder %s1756_s27, 3 }
  0x29   : > { %p480_p9 = pnand %p1591_p7, %p479_p8 }
  0x2a   : > { %p538_p10 = scmp.lt.s32.totalorder (!%p480_p9), %s1848_s28, 1  ;;  %s486_s14 = sand.u32 (!%p480_p9), 1, %s1748_s25  }
  0x2b   : > { %483 = sbr.rel (%p480_p9) target bundleno = 1711 (0x6af), region = 102  ;;  %s2548_s0 = sld [smem:[#allocation4_spill]] (!%p480_p9) }
  0x2c   : > { %s1688_s17 = smul.u32 (!%p480_p9), 96, %s486_s14  ;;  %s2538_s22 = smov (!%p480_p9), 32  }
  0x2d   : > { %s2540_s24 = smov (!%p480_p9), 64   ;;  %s2542_s20 = smov (!%p480_p9), 96  }
  0x2e   : > { %s1884_s27 = scalar_lea.vmem (!%p480_p9), [#allocation2], %s1688_s17  ;;  %s1899_s23 = scalar_lea.vmem (!%p480_p9), [#allocation3], %s1688_s17 }
  0x30   : > { %v552_v12 = vld [vmem:[%s2526_s3] sm:$0x3]  ;;  %vm564_vm0 = vcmask 1041408   ;;  %s1881_s18 = scalar_select %p538_p10, %s1848_s28, 1  ;;  %vm557_vm1 = vcmask 15360   ;;  %vm613_vm2 = vcmask 261120  }
  0x31   : > { %1596 = vmatpush.msk.msra.mxu0 %vm564_vm0, %v552_v12  ;;  %v1887_v13 = vld [vmem:[%s1884_s27 + $0x20] sm:$0xff]  ;;  %v1890_v14 = vld [vmem:[%s1884_s27 + $0x28] sm:$0xff]  ;;  %v1910_v16 = vld [vmem:[%s1884_s27 + $0x10] sm:$0xff]  ;;  %vm616_vm3 = vcmask 523264   ;;  %vm619_vm4 = vcmask 130048   ;;  %vm692_vm5 = vcmask 785408  }
  0x32   : > { %s2537_s19 = sshll.u32 %s1881_s18, 4  ;;  %599 = vrot.lane.b32.xlu1 %v1887_v13, %s2538_s22  ;;  %993 = vst.msk [vmem:[%s1899_s23 + $0x10] sm:$0xff] %vm613_vm2, %v1887_v13  ;;  %601 = vrot.lane.b32.xlu0 %v1890_v14, %s2538_s22  ;;  %v1917_v17 = vld [vmem:[%s1884_s27 + $0x18] sm:$0xff]  ;;  %vm865_vm6 = vcmask 130112   ;;  %vm873_vm7 = vcmask 1041409   ;;  %vm875_vm8 = vcmask 1042434  }
  0x33   : > { %s542_s21 = scalar_lea.vmem %s2548_s0, %s2537_s19  ;;  %994 = vst.msk [vmem:[%s1899_s23 + $0x18] sm:$0xff] %vm613_vm2, %v1890_v14  ;;  %v1721_v22 = vld [vmem:[%s2527_s4] ss:$0 sm:$0xff]  ;;  %v1950_v33 = vld [vmem:[%s2525_s2 + $0x8] sm:$0xff]  ;;  %v712_v34 = vld [vmem:[%s2528_s5 + $0x78] sm:$0xff]  ;;  %vm878_vm9 = vcmask 124928  }
  0x34   : > { %v550_v15 = vld [vmem:[%s542_s21] sm:$0xff]  ;;  %991 = vst.msk [vmem:[%s1899_s23] sm:$0xff] %vm613_vm2, %v1910_v16  ;;  %v551_v18 = vld [vmem:[%s542_s21 + $0x8] sm:$0xff]  ;;  %v711_v35 = vld [vmem:[%s2528_s5 + $0x70] sm:$0xff]  ;;  %741 = vmatpush.msra.mxu3 %v712_v34  ;;  %s2549_s21 = smov 64   ;;  %vm887_vm12 = vcmask 2048  }
  0x35   : > { %1597 = vmatmul.msk.f32.vlgmr.msra.gmra.mxu0 %vm557_vm1, %v550_v15  ;;  %992 = vst.msk [vmem:[%s1899_s23 + $0x8] sm:$0xff] %vm613_vm2, %v1917_v17  ;;  %v1939_v31 = vld [vmem:[%s2525_s2] sm:$0xff]  ;;  %v710_v36 = vld [vmem:[%s2528_s5 + $0x68] sm:$0xff]  ;;  %v708_v38 = vld [vmem:[%s2528_s5 + $0x58] sm:$0xff]  ;;  %s2550_s0 = smov 32   ;;  %s2552_s22 = sshll.u32 %s1881_s18, 4 }
  0x36   : > { %742 = vmatpush.msra.mxu3 %v711_v35  ;;  %v709_v37 = vld [vmem:[%s2528_s5 + $0x60] sm:$0xff]  ;;  %v707_v39 = vld [vmem:[%s2528_s5 + $0x50] sm:$0xff]  ;;  %v706_v40 = vld [vmem:[%s2528_s5 + $0x48] sm:$0xff]  ;;  %s547_s30 = scalar_lea.vmem %s2535_s12, %s2552_s22  ;;  %s1689_s18 = smul.u32 (%p1863_p5), 48, %s1848_s28 }
  0x37   : > { %v705_v42 = vld [vmem:[%s2528_s5 + $0x40] sm:$0xff]  ;;  %v704_v43 = vld [vmem:[%s2528_s5 + $0x38] sm:$0xff]  ;;  %v703_v44 = vld [vmem:[%s2528_s5 + $0x30] sm:$0xff] }
  0x38   : > { %743 = vmatpush.msra.mxu3 %v710_v36  ;;  %v702_v45 = vld [vmem:[%s2528_s5 + $0x28] sm:$0xff]  ;;  %v701_v47 = vld [vmem:[%s2528_s5 + $0x20] sm:$0xff]  ;;  %v700_v48 = vld [vmem:[%s2528_s5 + $0x18] sm:$0xff] }
  0x39   : > { %v699_v49 = vld [vmem:[%s2528_s5 + $0x10] sm:$0xff]  ;;  %v698_v50 = vld [vmem:[%s2528_s5 + $0x8] sm:$0xff]  ;;  %v697_v51 = vld [vmem:[%s2528_s5] sm:$0xff] }
  0x3a   : > { %607 = vrot.lane.b32.xlu1 %v1910_v16, %s2540_s24  ;;  %609 = vrot.lane.b32.xlu0 %v1917_v17, %s2540_s24  ;;  %v591_v56 = vld [vmem:[%s1884_s27] sm:$0xff]  ;;  %v819_v1 = vld [vmem:[%s2532_s9 + $0x18] sm:$0xff]  ;;  %s2551_s24 = smov 96  }
  0x3b   : > { %744 = vmatpush.msra.mxu3 %v709_v37  ;;  %v816_v57 = vld [vmem:[%s2532_s9] sm:$0xff]  ;;  %v2035_v3 = vadd.f32 %v819_v1, %v1917_v17  ;;  %v829_v5 = vld [vmem:[%s2533_s10 + $0x8] sm:$0xff]  ;;  %v724_v34 = vld [vmem:[%s2528_s5 + $0xd8] sm:$0xff] }
  0x3c   : > { %v828_v58 = vld [vmem:[%s2533_s10] sm:$0xff]  ;;  %v2025_v59 = vadd.f32 %v816_v57, %v591_v56  ;;  %v592_v15 = vld [vmem:[%s1884_s27 + $0x8] sm:$0xff]  ;;  %v723_v36 = vld [vmem:[%s2528_s5 + $0xd0] sm:$0xff]  ;;  %v860_v56 = vlaneseq }
  0x3d   : > { %1598 = vmatmul.msk.f32.gmra.mxu0 %vm557_vm1, %v551_v18  ;;  %745 = vmatpush.msra.mxu3 %v708_v38  ;;  %v833_v7 = vmul.f32 %v829_v5, %v2035_v3  ;;  %v820_v8 = vld [vmem:[%s2532_s9 + $0x20] sm:$0xff]  ;;  %v817_v17 = vld [vmem:[%s2532_s9 + $0x8] sm:$0xff] }
  0x3e   : > { %v830_v60 = vmul.f32 %v828_v58, %v2025_v59  ;;  %v2048_v10 = vadd.f32 %v820_v8, %v1887_v13  ;;  %v2056_v18 = vadd.f32 %v817_v17, %v592_v15  ;;  %v818_v13 = vld [vmem:[%s2532_s9 + $0x10] sm:$0xff]  ;;  %v730_v35 = vld [vmem:[%s2528_s5 + $0x108] sm:$0xff]  ;;  %v729_v37 = vld [vmem:[%s2528_s5 + $0x100] sm:$0xff] }
  0x3f   : > { %746 = vmatpush.msra.mxu3 %v707_v39  ;;  %v845_v9 = vsel %vm613_vm2, %v833_v7, 0.0  ;;  %v722_v38 = vld [vmem:[%s2528_s5 + $0xc8] sm:$0xff]  ;;  %v721_v39 = vld [vmem:[%s2528_s5 + $0xc0] sm:$0xff]  ;;  %v956_v15 = vld [vmem:[%s2530_s7 + $0x10] sm:$0xff] }
  0x40   : > { %v836_v61 = vsel %vm613_vm2, %v830_v60, 0.0  ;;  %v834_v11 = vmul.f32 %v828_v58, %v2048_v10  ;;  %v955_v17 = vld [vmem:[%s2530_s7 + $0x8] sm:$0xff] }
  0x41   : > { %747 = vmatpush.msra.mxu3 %v706_v40  ;;  %v720_v40 = vld [vmem:[%s2528_s5 + $0xb8] sm:$0xff] }
  0x42   : > { %v848_v12 = vsel %vm613_vm2, %v834_v11, 0.0 }
  0x43   : > { %748 = vmatpush.msra.mxu3 %v705_v42  ;;  %v718_v42 = vld [vmem:[%s2528_s5 + $0xa8] sm:$0xff] }
  0x45   : > { %749 = vmatpush.msra.mxu3 %v704_v43  ;;  %v717_v43 = vld [vmem:[%s2528_s5 + $0xa0] sm:$0xff] }
  0x47   : > { %750 = vmatpush.msra.mxu3 %v703_v44  ;;  %v716_v44 = vld [vmem:[%s2528_s5 + $0x98] sm:$0xff] }
  0x49   : > { %751 = vmatpush.msra.mxu3 %v702_v45  ;;  %v715_v45 = vld [vmem:[%s2528_s5 + $0x90] sm:$0xff] }
  0x4b   : > { %752 = vmatpush.msra.mxu3 %v701_v47  ;;  %v713_v47 = vld [vmem:[%s2528_s5 + $0x80] sm:$0xff] }
  0x4d   : > { %753 = vmatpush.msra.mxu3 %v700_v48 }
  0x4f   : > { %754 = vmatpush.msra.mxu3 %v699_v49 }
  0x51   : > { %755 = vmatpush.msra.mxu3 %v698_v50 }
  0x53   : > { %756 = vmatpush.msra.mxu3 %v697_v51 }
  0xa4   : > { %v602_v19 = vpop.permute.xlu0 %601  ;;  %v600_v21 = vpop.permute.xlu1 %599 }
  0xac   : > { %v610_v26 = vpop.permute.xlu0 %609  ;;  %v608_v27 = vpop.permute.xlu1 %607 }
  0xb2   : > { %v585_v20 = vpop.f32.mrf.mxu0 }
  0xb3   : > { %v586_v23 = vadd.f32 %v1721_v22, %v585_v20  ;;  %v821_v20 = vld [vmem:[%s2532_s9 + $0x28] sm:$0xff] }
  0xb5   : > { %v614_v29 = vsel %vm613_vm2, %v586_v23, %v600_v21  ;;  %v2066_v21 = vadd.f32 %v821_v20, %v1890_v14  ;;  %v728_v14 = vld [vmem:[%s2528_s5 + $0xf8] sm:$0xff] }
  0xb6   : > { %v1942_v32 = vsel %vm616_vm3, %v614_v29, %v608_v27  ;;  %764 = vmatpush.msrb.mxu0 %v728_v14  ;;  %v725_v29 = vld [vmem:[%s2528_s5 + $0xe0] sm:$0xff] }
  0xba   : > { %v588_v24 = vpop.f32.mrf.mxu0 }
  0xbb   : > { %v589_v25 = vadd.f32 %v1721_v22, %v588_v24  ;;  %v2069_v22 = vadd.f32 %v818_v13, %v1910_v16  ;;  %v727_v16 = vld [vmem:[%s2528_s5 + $0xf0] sm:$0xff]  ;;  %v1722_v13 = vld [vmem:[%s2529_s6] ss:$0 sm:$0xff] }
  0xbc   : > { %765 = vmatpush.msrb.mxu0 %v727_v16 }
  0xbd   : > { %v615_v28 = vsel %vm613_vm2, %v589_v25, %v602_v19  ;;  %v831_v19 = vmul.f32 %v829_v5, %v2056_v18  ;;  %v832_v24 = vmul.f32 %v828_v58, %v2069_v22  ;;  %v835_v25 = vmul.f32 %v829_v5, %v2066_v21 }
  0xbe   : > { %v1933_v30 = vsel %vm616_vm3, %v615_v28, %v610_v26  ;;  %v726_v28 = vld [vmem:[%s2528_s5 + $0xe8] sm:$0xff]  ;;  %v2142_v58 = vand.u32 127, %v860_v56 }
  0xbf   : > { %640 = vmatpush.msra.mxu1 %v1933_v30  ;;  %v839_v23 = vsel %vm613_vm2, %v831_v19, 0.0  ;;  %v842_v26 = vsel %vm613_vm2, %v832_v24, 0.0  ;;  %v851_v27 = vsel %vm613_vm2, %v835_v25, 0.0  ;;  %766 = vmatpush.msrb.mxu0 %v726_v28  ;;  %v954_v19 = vld [vmem:[%s2530_s7] sm:$0xff] }
  0xc0   : > { %v2145_v60 = vadd.s32 4294967288, %v2142_v58 }
  0xc1   : > { %641 = vmatpush.msra.mxu1 %v1942_v32  ;;  %767 = vmatpush.msrb.mxu0 %v725_v29 }
  0xc2   : > { %1599 = vmatmul.msk.f32.vlgmr.msra.gmra.mxu1 %vm619_vm4, %v1939_v31 }
  0xc3   : > { %768 = vmatpush.msrb.mxu0 %v724_v34 }
  0xc5   : > { %769 = vmatpush.msrb.mxu0 %v723_v36 }
  0xc7   : > { %770 = vmatpush.msrb.mxu0 %v722_v38  ;;  %v1723_v38 = vld [vmem:[%s2534_s11] ss:$0 sm:$0xff] }
  0xc9   : > { %771 = vmatpush.msrb.mxu0 %v721_v39 }
  0xca   : > { %1600 = vmatmul.msk.f32.gmra.mxu1 %vm619_vm4, %v1950_v33 }
  0xcb   : > { %772 = vmatpush.msrb.mxu0 %v720_v40 }
 0x13f   : > { %v643_v41 = vpop.f32.mrf.mxu1 }
 0x140   : > { %678 = vrot.lane.b32.xlu2 %v643_v41, %s2542_s20 }
 0x147   : > { %v646_v46 = vpop.f32.mrf.mxu1 }
 0x148   : > { %680 = vrot.lane.b32.xlu2 %v646_v46, %s2542_s20  ;;  %663 = vmatpush.msra.mxu2 %v646_v46  ;;  %v714_v46 = vld [vmem:[%s2528_s5 + $0x88] sm:$0xff] }
 0x14a   : > { %664 = vmatpush.msra.mxu2 %v643_v41  ;;  %v719_v41 = vld [vmem:[%s2528_s5 + $0xb0] sm:$0xff] }
 0x14b   : > { %1601 = vmatmul.msk.f32.vlgmr.msra.gmra.mxu2 %vm619_vm4, %v1939_v31  ;;  %773 = vmatpush.msrb.mxu0 %v719_v41 }
 0x14d   : > { %774 = vmatpush.msrb.mxu0 %v718_v42 }
 0x14f   : > { %775 = vmatpush.msrb.mxu0 %v717_v43 }
 0x151   : > { %776 = vmatpush.msrb.mxu0 %v716_v44 }
 0x153   : > { %1602 = vmatmul.msk.f32.gmra.mxu2 %vm619_vm4, %v1950_v33  ;;  %777 = vmatpush.msrb.mxu0 %v715_v45  ;;  %v1761_v45 = vmov 0  }
 0x154   : > { %1718 = vset.pattern.permute.xlu2 %v1761_v45  ;;  %1720 = vset.pattern.permute.xlu1 %v1761_v45 }
 0x155   : > { %778 = vmatpush.msrb.mxu0 %v714_v46  ;;  %1719 = vset.pattern.permute.xlu0 %v1761_v45 }
 0x157   : > { %779 = vmatpush.msrb.mxu0 %v713_v47 }
 0x171   : > { %837 = vadd.xlane.f32.xlu2 %v836_v61 }
 0x179   : > { %846 = vadd.xlane.f32.xlu2 %v845_v9 }
 0x181   : > { %849 = vadd.xlane.f32.xlu2 %v848_v12  ;;  %v957_v12 = vld [vmem:[%s2530_s7 + $0x18] sm:$0xff] }
 0x182   : > { %978 = vmatpush.msrb.mxu2 %v957_v12 }
 0x184   : > { %979 = vmatpush.msrb.mxu2 %v956_v15 }
 0x186   : > { %980 = vmatpush.msrb.mxu2 %v955_v17 }
 0x188   : > { %981 = vmatpush.msrb.mxu2 %v954_v19 }
 0x19a   : > { %v2008_v52 = vpop.permute.xlu2 %678 }
 0x19b   : > { %v693_v53 = vsel %vm692_vm5, %v1942_v32, %v2008_v52 }
 0x19c   : > { %757 = vmatmul.f32.vlgmr.msra.gmra.mxu3 %v693_v53 }
 0x1a2   : > { %v2013_v54 = vpop.permute.xlu2 %680 }
 0x1a3   : > { %v694_v55 = vsel %vm692_vm5, %v1933_v30, %v2013_v54 }
 0x1a4   : > { %760 = vmatmul.f32.gmra.mxu3 %v694_v55 }
 0x1ce   : > { %v666_v62 = vpop.f32.mrf.mxu2 }
 0x1cf   : > { %v672_v63 = vmul.f32 2.0, %v666_v62 }
 0x1d1   : > { %v674_v0 = vsub.f32 %v672_v63, %v1942_v32  ;;  %v731_v32 = vld [vmem:[%s2528_s5 + $0x110] sm:$0xff] }
 0x1d3   : > { %686 = vrot.lane.b32.xlu0 %v674_v0, %s2549_s21 }
 0x1d6   : > { %v669_v2 = vpop.f32.mrf.mxu2 }
 0x1d7   : > { %v673_v4 = vmul.f32 2.0, %v669_v2 }
 0x1d9   : > { %v675_v6 = vsub.f32 %v673_v4, %v1933_v30  ;;  %v732_v30 = vld [vmem:[%s2528_s5 + $0x118] sm:$0xff] }
 0x1da   : > { %799 = vmatpush.msrb.mxu1 %v732_v30 }
 0x1db   : > { %688 = vrot.lane.b32.xlu1 %v675_v6, %s2549_s21 }
 0x1dc   : > { %800 = vmatpush.msrb.mxu1 %v731_v32 }
 0x1de   : > { %801 = vmatpush.msrb.mxu1 %v730_v35 }
 0x1e0   : > { %802 = vmatpush.msrb.mxu1 %v729_v37 }
 0x1e4   : > { %v838_v53 = vpop.xlane.xlu2 %837 }
 0x1e5   : > { %v862_v63 = vperm.slane %v838_v53, %v2142_v58 }
 0x1ec   : > { %v847_v55 = vpop.xlane.xlu2 %846 }
 0x1ed   : > { %v868_v1 = vperm.slane %v847_v55, %v2145_v60 }
 0x1f4   : > { %v850_v61 = vpop.xlane.xlu2 %849 }
 0x1f5   : > { %v870_v62 = vperm.slane %v850_v61, %v2142_v58 }
 0x1fd   : > { %840 = vadd.xlane.f32.xlu0 %v839_v23 }
 0x205   : > { %843 = vadd.xlane.f32.xlu1 %v842_v26  ;;  %852 = vadd.xlane.f32.xlu0 %v851_v27 }
 0x21f   : > { %v758_v20 = vpop.f32.mrf.mxu3 }
 0x220   : > { %v759_v23 = vadd.f32 %v1722_v13, %v758_v20 }
 0x227   : > { %v761_v14 = vpop.f32.mrf.mxu3 }
 0x228   : > { %v762_v28 = vadd.f32 %v1722_v13, %v761_v14 }
 0x245   : > { %v687_v48 = vpop.permute.xlu0 %686 }
 0x246   : > { %1603 = vmatmul.msk.f32.vlgmr.msrb.gmra.mxu1 %vm613_vm2, %v687_v48  ;;  %v695_v49 = vsel %vm616_vm3, %v2008_v52, %v687_v48 }
 0x247   : > { %780 = vmatmul.f32.vlgmr.msrb.gmra.mxu0 %v695_v49 }
 0x24d   : > { %v689_v50 = vpop.permute.xlu1 %688 }
 0x24e   : > { %1604 = vmatmul.msk.f32.gmra.mxu1 %vm613_vm2, %v689_v50  ;;  %v696_v51 = vsel %vm616_vm3, %v2013_v54, %v689_v50 }
 0x24f   : > { %783 = vmatmul.f32.gmra.mxu0 %v696_v51 }
 0x270   : > { %v841_v57 = vpop.xlane.xlu0 %840 }
 0x271   : > { %v864_v52 = vperm.slane %v841_v57, %v2145_v60  ;;  %v2182_v57 = vld [vmem:[%s1884_s27 + $0x48] sm:$0xff] }
 0x272   : > { %1676 = vst.msk [vmem:[%s1899_s23 + $0x38] sm:$0xff] %vm613_vm2, %v2182_v57 }
 0x273   : > { %v866_v5 = vsel %vm865_vm6, %v864_v52, %v862_v63 }
 0x278   : > { %v844_v0 = vpop.xlane.xlu1 %843  ;;  %v853_v54 = vpop.xlane.xlu0 %852 }
 0x279   : > { %v867_v2 = vperm.slane %v844_v0, %v2142_v58  ;;  %v871_v4 = vperm.slane %v853_v54, %v2145_v60  ;;  %v2188_v0 = vld [vmem:[%s1884_s27 + $0x40] sm:$0xff] }
 0x27a   : > { %1675 = vst.msk [vmem:[%s1899_s23 + $0x30] sm:$0xff] %vm613_vm2, %v2188_v0 }
 0x27b   : > { %v869_v6 = vsel %vm865_vm6, %v868_v1, %v867_v2  ;;  %v872_v7 = vsel %vm865_vm6, %v871_v4, %v870_v62  ;;  %v2194_v2 = vld [vmem:[%s1884_s27 + $0x58] sm:$0xff] }
 0x27c   : > { %v874_v8 = vsel %vm873_vm7, %v869_v6, %v866_v5  ;;  %1678 = vst.msk [vmem:[%s1899_s23 + $0x48] sm:$0xff] %vm613_vm2, %v2194_v2 }
 0x27d   : > { %v876_v9 = vsel %vm875_vm8, %v872_v7, %v874_v8 }
 0x27e   : > { %v879_v11 = vsel %vm878_vm9, %v876_v9, 0.0 }
 0x27f   : > { %880 = vadd.xlane.f32.xlu1 %v879_v11 }
 0x2c3   : > { %v804_v24 = vpop.f32.mrf.mxu1 }
 0x2c4   : > { %v781_v25 = vpop.f32.mrf.mxu0 }
 0x2c5   : > { %v782_v26 = vadd.f32 %v781_v25, %v759_v23 }
 0x2c7   : > { %v805_v27 = vadd.f32 %v804_v24, %v782_v26  ;;  %v2200_v24 = vld [vmem:[%s1884_s27 + $0x50] sm:$0xff] }
 0x2c8   : > { %1677 = vst.msk [vmem:[%s1899_s23 + $0x40] sm:$0xff] %vm613_vm2, %v2200_v24 }
 0x2c9   : > { %v812_v16 = vmul.f32 0.01, %v805_v27  ;;  %vm810_vm10 = vcmp.ge.f32.partialorder %v805_v27, 0.0 }
 0x2cb   : > { %v814_v29 = vsel %vm810_vm10, %v805_v27, %v812_v16  ;;  %v807_v34 = vpop.f32.mrf.mxu1 }
 0x2cc   : > { %v784_v30 = vpop.f32.mrf.mxu0  ;;  %1605 = vmatmul.msk.f32.vlgmr.msrb.gmra.mxu2 %vm613_vm2, %v814_v29 }
 0x2cd   : > { %v785_v32 = vadd.f32 %v784_v30, %v762_v28 }
 0x2cf   : > { %v808_v35 = vadd.f32 %v807_v34, %v785_v32 }
 0x2d1   : > { %vm811_vm11 = vcmp.ge.f32.partialorder %v808_v35, 0.0  ;;  %v813_v36 = vmul.f32 0.01, %v808_v35 }
 0x2d3   : > { %v815_v37 = vsel %vm811_vm11, %v808_v35, %v813_v36  ;;  %v958_v35 = vld [vmem:[%s2531_s8] sm:$0xff] }
 0x2d4   : > { %1606 = vmatmul.msk.f32.gmra.mxu2 %vm613_vm2, %v815_v37 }
 0x2f2   : > { %v881_v39 = vpop.xlane.xlu1 %880 }
 0x2f3   : > { %v886_v40 = vadd.f32 %v1723_v38, %v881_v39 }
 0x2f5   : > { %v888_v41 = vsel %vm887_vm12, %v886_v40, -inf }
 0x2f6   : > { %v889_v42 = vrot.slane %v888_v41, 4 }
 0x2f8   : > { %v890_v43 = vmax.f32 %v888_v41, %v889_v42 }
 0x2fa   : > { %v891_v44 = vrot.slane %v890_v43, 2 }
 0x2fc   : > { %v892_v46 = vmax.f32 %v890_v43, %v891_v44 }
 0x2fe   : > { %v893_v47 = vrot.slane %v892_v46, 1 }
 0x300   : > { %v894_v48 = vmax.f32 %v892_v46, %v893_v47 }
 0x302   : > { %v895_v49 = vsub.f32 %v886_v40, %v894_v48 }
 0x304   : > { %v896_v50 = vmul.f32 1.442695, %v895_v49 }
 0x306   : > { %1726 = vpow2.f32 %v896_v50 }
 0x30c   : > { %v1727_v51 = vpop.eup %1726 }
 0x30d   : > { %v898_v53 = vsel %vm887_vm12, %v1727_v51, 0.0 }
 0x30e   : > { %v899_v55 = vrot.slane %v898_v53, 4 }
 0x310   : > { %v900_v56 = vadd.f32 %v899_v55, %v898_v53 }
 0x312   : > { %v901_v61 = vrot.slane %v900_v56, 2 }
 0x314   : > { %v902_v52 = vadd.f32 %v901_v61, %v900_v56  ;;  %v1634_v56 = vld [vmem:[%s2528_s5 + $0x198] sm:$0xff]  ;;  %v1633_v61 = vld [vmem:[%s2528_s5 + $0x190] sm:$0xff] }
 0x315   : > { %1141 = vmatpush.msrb.mxu3 %v1634_v56  ;;  %v1644_v56 = vld [vmem:[%s2528_s5 + $0x1e8] sm:$0xff] }
 0x316   : > { %v903_v62 = vrot.slane %v902_v52, 1 }
 0x317   : > { %1142 = vmatpush.msrb.mxu3 %v1633_v61  ;;  %v1643_v61 = vld [vmem:[%s2528_s5 + $0x1e0] sm:$0xff] }
 0x318   : > { %v904_v63 = vadd.f32 %v903_v62, %v902_v52  ;;  %v1632_v52 = vld [vmem:[%s2528_s5 + $0x188] sm:$0xff]  ;;  %v1631_v62 = vld [vmem:[%s2528_s5 + $0x180] sm:$0xff] }
 0x319   : > { %1143 = vmatpush.msrb.mxu3 %v1632_v52  ;;  %v1642_v52 = vld [vmem:[%s2528_s5 + $0x1d8] sm:$0xff] }
 0x31a   : > { %1728 = vrcp.f32 %v904_v63  ;;  %v916_v5 = vand.u32 2147483648, %v904_v63  ;;  %v914_v7 = vand.u32 2147483647, %v904_v63  ;;  %vm910_vm14 = vweird.f32 %v904_v63 }
 0x31b   : > { %1144 = vmatpush.msrb.mxu3 %v1631_v62  ;;  %v1641_v62 = vld [vmem:[%s2528_s5 + $0x1d0] sm:$0xff] }
 0x31c   : > { %v917_v9 = vor.u32 1.1754944e-38, %v916_v5  ;;  %vm915_vm0 = vcmp.eq.f32.partialorder %v914_v7, 8.507059e+37  ;;  %v1627_v5 = vld [vmem:[%s2528_s5 + $0x160] sm:$0xff]  ;;  %v1625_v7 = vld [vmem:[%s2528_s5 + $0x150] sm:$0xff] }
 0x320   : > { %v1729_v54 = vpop.eup %1728 }
 0x321   : > { %v906_v1 = vmul.f32 %v1729_v54, %v904_v63  ;;  %vm911_vm13 = vweird.f32 %v1729_v54  ;;  %v1630_v63 = vld [vmem:[%s2528_s5 + $0x178] sm:$0xff] }
 0x322   : > { %vm912_vm15 = vmor %vm910_vm14, %vm911_vm13  ;;  %1145 = vmatpush.msrb.mxu3 %v1630_v63  ;;  %v1640_v63 = vld [vmem:[%s2528_s5 + $0x1c8] sm:$0xff] }
 0x323   : > { %v907_v4 = vsub.f32 1.0, %v906_v1  ;;  %v1628_v1 = vld [vmem:[%s2528_s5 + $0x168] sm:$0xff] }
 0x325   : > { %v908_v6 = vmul.f32 %v1729_v54, %v907_v4 }
 0x327   : > { %v909_v8 = vadd.f32 %v1729_v54, %v908_v6  ;;  %v1626_v6 = vld [vmem:[%s2528_s5 + $0x158] sm:$0xff] }
 0x329   : > { %v913_v11 = vsel %vm912_vm15, %v1729_v54, %v909_v8  ;;  %v1629_v54 = vld [vmem:[%s2528_s5 + $0x170] sm:$0xff]  ;;  %v1624_v8 = vld [vmem:[%s2528_s5 + $0x148] sm:$0xff] }
 0x32a   : > { %v918_v12 = vsel %vm915_vm0, %v917_v9, %v913_v11  ;;  %1146 = vmatpush.msrb.mxu3 %v1629_v54  ;;  %v1623_v11 = vld [vmem:[%s2528_s5 + $0x140] sm:$0xff] }
 0x32b   : > { %v919_v15 = vmul.f32 %v1727_v51, %v918_v12  ;;  %v1622_v12 = vld [vmem:[%s2528_s5 + $0x138] sm:$0xff]  ;;  %v1639_v54 = vld [vmem:[%s2528_s5 + $0x1c0] sm:$0xff] }
 0x32c   : > { %1147 = vmatpush.msrb.mxu3 %v1628_v1  ;;  %v1654_v1 = vld [vmem:[%s2528_s5 + $0x238] sm:$0xff] }
 0x32d   : > { %v923_v17 = vperm.slane %v919_v15, 0  ;;  %v922_v19 = vrot.slane %v919_v15, 2  ;;  %v921_v20 = vrot.slane %v919_v15, 1  ;;  %v1621_v15 = vld [vmem:[%s2528_s5 + $0x130] sm:$0xff] }
 0x32e   : > { %1148 = vmatpush.msrb.mxu3 %v1627_v5  ;;  %v1653_v5 = vld [vmem:[%s2528_s5 + $0x230] sm:$0xff] }
 0x32f   : > { %927 = vperm.xlu2 %1718, %v923_v17   ;;  %v925_v13 = vperm.slane %v922_v19, 0  ;;  %v924_v23 = vperm.slane %v921_v20, 0  ;;  %v1620_v17 = vld [vmem:[%s2528_s5 + $0x128] sm:$0xff]  ;;  %v1619_v19 = vld [vmem:[%s2528_s5 + $0x120] sm:$0xff] }
 0x330   : > { %1149 = vmatpush.msrb.mxu3 %v1626_v6  ;;  %v1637_v6 = vld [vmem:[%s2528_s5 + $0x1b0] sm:$0xff] }
 0x331   : > { %935 = vperm.xlu1 %1720, %v925_v13   ;;  %931 = vperm.xlu0 %1719, %v924_v23  }
 0x332   : > { %1150 = vmatpush.msrb.mxu3 %v1625_v7  ;;  %v1652_v7 = vld [vmem:[%s2528_s5 + $0x228] sm:$0xff] }
 0x334   : > { %1151 = vmatpush.msrb.mxu3 %v1624_v8  ;;  %v1636_v8 = vld [vmem:[%s2528_s5 + $0x1a8] sm:$0xff] }
 0x336   : > { %1152 = vmatpush.msrb.mxu3 %v1623_v11  ;;  %v1635_v11 = vld [vmem:[%s2528_s5 + $0x1a0] sm:$0xff] }
 0x337   : > { %1009 = vrot.lane.b32.xlu2 %v2194_v2, %s2550_s0 }
 0x338   : > { %1153 = vmatpush.msrb.mxu3 %v1622_v12 }
 0x339   : > { %1017 = vrot.lane.b32.xlu1 %v2182_v57, %s2549_s21 }
 0x33a   : > { %1154 = vmatpush.msrb.mxu3 %v1621_v15 }
 0x33c   : > { %1155 = vmatpush.msrb.mxu3 %v1620_v17 }
 0x33e   : > { %1156 = vmatpush.msrb.mxu3 %v1619_v19 }
 0x33f   : > { %1007 = vrot.lane.b32.xlu2 %v2200_v24, %s2550_s0 }
 0x341   : > { %1015 = vrot.lane.b32.xlu1 %v2188_v0, %s2549_s21 }
 0x34f   : > { %v983_v25 = vpop.f32.mrf.mxu2 }
 0x350   : > { %v984_v41 = vadd.f32 %v983_v25, %v958_v35  ;;  %v1609_v25 = vld [vmem:[%s1884_s27 + $0x30] sm:$0xff] }
 0x357   : > { %v986_v36 = vpop.f32.mrf.mxu2 }
 0x389   : > { %v928_v26 = vpop.permute.xlu2 %927 }
 0x38a   : > { %v938_v27 = vmul.f32 %v928_v26, %v2025_v59  ;;  %v939_v14 = vmul.f32 %v928_v26, %v2056_v18  ;;  %v959_v59 = vld [vmem:[%s2531_s8 + $0x8] sm:$0xff]  ;;  %v1664_v26 = vld [vmem:[%s2533_s10 + $0x10] sm:$0xff] }
 0x38b   : > { %v987_v42 = vadd.f32 %v986_v36, %v959_v59  ;;  %v1661_v59 = vld [vmem:[%s2532_s9 + $0x48] sm:$0xff] }
 0x38c   : > { %v944_v18 = vsel %vm613_vm2, %v938_v27, 0.0  ;;  %v2327_v36 = vadd.f32 %v1661_v59, %v2182_v57  ;;  %v1660_v57 = vld [vmem:[%s2532_s9 + $0x40] sm:$0xff] }
 0x3a3   : > { %v936_v16 = vpop.permute.xlu1 %935  ;;  %v932_v28 = vpop.permute.xlu0 %931 }
 0x3a4   : > { %v942_v29 = vmul.f32 %v936_v16, %v2048_v10  ;;  %v943_v30 = vmul.f32 %v936_v16, %v2066_v21  ;;  %v940_v32 = vmul.f32 %v932_v28, %v2069_v22  ;;  %v941_v34 = vmul.f32 %v932_v28, %v2035_v3  ;;  %v1010_v3 = vpop.permute.xlu2 %1009 }
 0x3a5   : > { %v949_v10 = vsel %vm613_vm2, %v939_v14, 0.0 }
 0x3a6   : > { %v945_v21 = vsel %vm613_vm2, %v940_v32, 0.0  ;;  %v950_v22 = vsel %vm613_vm2, %v941_v34, 0.0  ;;  %v947_v39 = vsel %vm613_vm2, %v942_v29, 0.0  ;;  %v952_v40 = vsel %vm613_vm2, %v943_v30, 0.0 }
 0x3a7   : > { %v946_v37 = vadd.f32 %v945_v21, %v944_v18  ;;  %v951_v38 = vadd.f32 %v950_v22, %v949_v10  ;;  %v1665_v18 = vld [vmem:[%s2533_s10 + $0x18] sm:$0xff] }
 0x3a8   : > { %v1235_v10 = vmul.f32 %v1665_v18, %v2327_v36  ;;  %v1610_v22 = vld [vmem:[%s1884_s27 + $0x38] sm:$0xff] }
 0x3a9   : > { %v948_v43 = vadd.f32 %v947_v39, %v946_v37  ;;  %v953_v44 = vadd.f32 %v952_v40, %v951_v38  ;;  %v1662_v39 = vld [vmem:[%s2532_s9 + $0x50] sm:$0xff]  ;;  %v2348_v40 = vadd.f32 %v1660_v57, %v2188_v0 }
 0x3aa   : > { %v1247_v21 = vsel %vm613_vm2, %v1235_v10, 0.0  ;;  %v1649_v0 = vld [vmem:[%s2528_s5 + $0x210] sm:$0xff] }
 0x3ab   : > { %v990_v45 = vadd.f32 %v987_v42, %v953_v44  ;;  %v1018_v46 = vpop.permute.xlu1 %1017  ;;  %v989_v47 = vadd.f32 %v984_v41, %v948_v43  ;;  %v2351_v41 = vadd.f32 %v1662_v39, %v2200_v24  ;;  %v1234_v43 = vmul.f32 %v1664_v26, %v2348_v40  ;;  %v1663_v44 = vld [vmem:[%s2532_s9 + $0x58] sm:$0xff] }
 0x3ac   : > { %v1008_v50 = vpop.permute.xlu2 %1007  ;;  %v2366_v24 = vadd.f32 %v1663_v44, %v2194_v2  ;;  %v1646_v2 = vld [vmem:[%s2528_s5 + $0x1f8] sm:$0xff] }
 0x3ad   : > { %1608 = vst.msk [vmem:[%s1899_s23 + $0x28] sm:$0xff] %vm613_vm2, %v990_v45  ;;  %v1022_v48 = vsel %vm613_vm2, %v990_v45, %v1010_v3  ;;  %v1021_v51 = vsel %vm613_vm2, %v989_v47, %v1008_v50  ;;  %v1659_v3 = vld [vmem:[%s2532_s9 + $0x38] sm:$0xff]  ;;  %v1236_v45 = vmul.f32 %v1664_v26, %v2351_v41  ;;  %v1647_v50 = vld [vmem:[%s2528_s5 + $0x200] sm:$0xff] }
 0x3ae   : > { %v2235_v49 = vsel %vm616_vm3, %v1022_v48, %v1018_v46  ;;  %1607 = vst.msk [vmem:[%s1899_s23 + $0x20] sm:$0xff] %vm613_vm2, %v989_v47  ;;  %v2338_v37 = vadd.f32 %v1659_v3, %v1610_v22  ;;  %v1650_v46 = vld [vmem:[%s2528_s5 + $0x218] sm:$0xff]  ;;  %v1244_v47 = vsel %vm613_vm2, %v1234_v43, 0.0  ;;  %v1667_v22 = vld [vmem:[%s2530_s7 + $0x20] sm:$0xff] }
 0x3af   : > { %1039 = vmatpush.msra.mxu1 %v2235_v49  ;;  %1164 = vmatpush.msra.mxu0 %v1650_v46  ;;  %v1250_v48 = vsel %vm613_vm2, %v1236_v45, 0.0  ;;  %v1724_v3 = vld [vmem:[%s2529_s6 + $0x1] ss:$0 sm:$0xff] }
 0x3b0   : > { %v1233_v38 = vmul.f32 %v1665_v18, %v2338_v37 }
 0x3b1   : > { %1165 = vmatpush.msra.mxu0 %v1649_v0 }
 0x3b2   : > { %v1241_v42 = vsel %vm613_vm2, %v1233_v38, 0.0 }
 0x3b3   : > { %v1016_v53 = vpop.permute.xlu1 %1015 }
 0x3b4   : > { %v1023_v55 = vsel %vm616_vm3, %v1021_v51, %v1016_v53  ;;  %v1237_v51 = vmul.f32 %v1665_v18, %v2366_v24  ;;  %v1645_v53 = vld [vmem:[%s2528_s5 + $0x1f0] sm:$0xff] }
 0x3b5   : > { %1040 = vmatpush.msra.mxu1 %v1023_v55 }
 0x3b6   : > { %1615 = vmatmul.msk.f32.vlgmr.msra.gmra.mxu1 %vm619_vm4, %v1939_v31 }
 0x3b7   : > { %1199 = vmatpush.msrb.mxu1 %v1654_v1 }
 0x3b9   : > { %1200 = vmatpush.msrb.mxu1 %v1653_v5 }
 0x3bb   : > { %1201 = vmatpush.msrb.mxu1 %v1652_v7 }
 0x3be   : > { %1616 = vmatmul.msk.f32.gmra.mxu1 %vm619_vm4, %v1950_v33 }
 0x433   : > { %v1042_v4 = vpop.f32.mrf.mxu1 }
 0x434   : > { %1077 = vrot.lane.b32.xlu2 %v1042_v4, %s2551_s24 }
 0x43b   : > { %v1045_v9 = vpop.f32.mrf.mxu1 }
 0x43c   : > { %1079 = vrot.lane.b32.xlu0 %v1045_v9, %s2551_s24  ;;  %1062 = vmatpush.msra.mxu2 %v1045_v9  ;;  %v1651_v9 = vld [vmem:[%s2528_s5 + $0x220] sm:$0xff]  ;;  %s1415_s24 = scalar_lea.vmem (%p1863_p5), %s2536_s13, %s1689_s18 }
 0x43d   : > { %1202 = vmatpush.msrb.mxu1 %v1651_v9 }
 0x43e   : > { %1063 = vmatpush.msra.mxu2 %v1042_v4  ;;  %v1638_v4 = vld [vmem:[%s2528_s5 + $0x1b8] sm:$0xff] }
 0x43f   : > { %1617 = vmatmul.msk.f32.vlgmr.msra.gmra.mxu2 %vm619_vm4, %v1939_v31 }
 0x447   : > { %1618 = vmatmul.msk.f32.gmra.mxu2 %vm619_vm4, %v1950_v33  ;;  %v1658_v33 = vld [vmem:[%s2532_s9 + $0x30] sm:$0xff] }
 0x448   : > { %v2316_v27 = vadd.f32 %v1658_v33, %v1609_v25 }
 0x44a   : > { %v1232_v14 = vmul.f32 %v1664_v26, %v2316_v27 }
 0x44c   : > { %v1238_v16 = vsel %vm613_vm2, %v1232_v14, 0.0 }
 0x466   : > { %1239 = vadd.xlane.f32.xlu0 %v1238_v16 }
 0x46e   : > { %1248 = vadd.xlane.f32.xlu0 %v1247_v21  ;;  %v1669_v21 = vld [vmem:[%s2530_s7 + $0x30] sm:$0xff] }
 0x48e   : > { %v2300_v31 = vpop.permute.xlu2 %1077 }
 0x48f   : > { %v1091_v20 = vsel %vm692_vm5, %v1023_v55, %v2300_v31 }
 0x490   : > { %1157 = vmatmul.f32.vlgmr.msrb.gmra.mxu3 %v1091_v20 }
 0x4ae   : > { %v2304_v13 = vpop.permute.xlu0 %1079 }
 0x4af   : > { %v1092_v23 = vsel %vm692_vm5, %v2235_v49, %v2304_v13 }
 0x4b0   : > { %1160 = vmatmul.f32.gmra.mxu3 %v1092_v23 }
 0x4c2   : > { %v1065_v28 = vpop.f32.mrf.mxu2 }
 0x4c3   : > { %v1071_v29 = vmul.f32 2.0, %v1065_v28 }
 0x4c5   : > { %v1073_v30 = vsub.f32 %v1071_v29, %v1023_v55  ;;  %v1253_v55 = vsel %vm613_vm2, %v1237_v51, 0.0 }
 0x4c7   : > { %1085 = vrot.lane.b32.xlu1 %v1073_v30, %s2549_s21 }
 0x4ca   : > { %v1068_v32 = vpop.f32.mrf.mxu2 }
 0x4cb   : > { %v1072_v34 = vmul.f32 2.0, %v1068_v32 }
 0x4cd   : > { %v1074_v35 = vsub.f32 %v1072_v34, %v2235_v49  ;;  %v1648_v49 = vld [vmem:[%s2528_s5 + $0x208] sm:$0xff] }
 0x4ce   : > { %1166 = vmatpush.msra.mxu0 %v1648_v49 }
 0x4cf   : > { %1087 = vrot.lane.b32.xlu2 %v1074_v35, %s2549_s21 }
 0x4d0   : > { %1167 = vmatpush.msra.mxu0 %v1647_v50 }
 0x4d2   : > { %1168 = vmatpush.msra.mxu0 %v1646_v2 }
 0x4d4   : > { %1169 = vmatpush.msra.mxu0 %v1645_v53 }
 0x4d6   : > { %1170 = vmatpush.msra.mxu0 %v1644_v56 }
 0x4d8   : > { %1171 = vmatpush.msra.mxu0 %v1643_v61 }
 0x4d9   : > { %v1240_v20 = vpop.xlane.xlu0 %1239 }
 0x4da   : > { %1172 = vmatpush.msra.mxu0 %v1642_v52  ;;  %v1262_v26 = vperm.slane %v1240_v20, %v2142_v58 }
 0x4dc   : > { %1173 = vmatpush.msra.mxu0 %v1641_v62 }
 0x4de   : > { %1174 = vmatpush.msra.mxu0 %v1640_v63 }
 0x4e0   : > { %1175 = vmatpush.msra.mxu0 %v1639_v54 }
 0x4e1   : > { %v1249_v33 = vpop.xlane.xlu0 %1248 }
 0x4e2   : > { %1176 = vmatpush.msra.mxu0 %v1638_v4  ;;  %v1266_v16 = vperm.slane %v1249_v33, %v2145_v60 }
 0x4e4   : > { %1177 = vmatpush.msra.mxu0 %v1637_v6 }
 0x4e6   : > { %1178 = vmatpush.msra.mxu0 %v1636_v8 }
 0x4e8   : > { %1179 = vmatpush.msra.mxu0 %v1635_v11 }
 0x4f1   : > { %1242 = vadd.xlane.f32.xlu1 %v1241_v42 }
 0x4f8   : > { %1245 = vadd.xlane.f32.xlu2 %v1244_v47 }
 0x4f9   : > { %1251 = vadd.xlane.f32.xlu1 %v1250_v48 }
 0x500   : > { %1254 = vadd.xlane.f32.xlu2 %v1253_v55  ;;  %v1725_v55 = vld [vmem:[%s2534_s11 + $0x1] ss:$0 sm:$0xff] }
 0x513   : > { %v1158_v57 = vpop.f32.mrf.mxu3 }
 0x514   : > { %v1159_v38 = vadd.f32 %v1724_v3, %v1158_v57 }
 0x529   : > { %v1088_v17 = vpop.permute.xlu2 %1087 }
 0x52a   : > { %v1094_v19 = vsel %vm616_vm3, %v2304_v13, %v1088_v17 }
 0x533   : > { %v1161_v45 = vpop.f32.mrf.mxu3 }
 0x534   : > { %v1162_v0 = vadd.f32 %v1724_v3, %v1161_v45 }
 0x539   : > { %v1086_v12 = vpop.permute.xlu1 %1085 }
 0x53a   : > { %v1093_v15 = vsel %vm616_vm3, %v2300_v31, %v1086_v12  ;;  %1656 = vmatmul.msk.f32.vlgmr.msrb.gmra.mxu1 %vm613_vm2, %v1086_v12 }
 0x53b   : > { %1180 = vmatmul.f32.vlgmr.msra.gmra.mxu0 %v1093_v15 }
 0x542   : > { %1657 = vmatmul.msk.f32.gmra.mxu1 %vm613_vm2, %v1088_v17 }
 0x543   : > { %1183 = vmatmul.f32.gmra.mxu0 %v1094_v19 }
 0x564   : > { %v1243_v23 = vpop.xlane.xlu1 %1242 }
 0x565   : > { %v1263_v14 = vperm.slane %v1243_v23, %v2145_v60 }
 0x567   : > { %v1264_v30 = vsel %vm865_vm6, %v1263_v14, %v1262_v26 }
 0x56b   : > { %v1246_v25 = vpop.xlane.xlu2 %1245 }
 0x56c   : > { %v1265_v31 = vperm.slane %v1246_v25, %v2142_v58  ;;  %v1252_v28 = vpop.xlane.xlu1 %1251 }
 0x56d   : > { %v1268_v29 = vperm.slane %v1252_v28, %v2142_v58  ;;  %v1670_v58 = vld [vmem:[%s2530_s7 + $0x38] sm:$0xff] }
 0x56e   : > { %v1267_v13 = vsel %vm865_vm6, %v1266_v16, %v1265_v31  ;;  %1375 = vmatpush.msrb.mxu2 %v1670_v58 }
 0x56f   : > { %v1271_v59 = vsel %vm873_vm7, %v1267_v13, %v1264_v30 }
 0x570   : > { %1376 = vmatpush.msrb.mxu2 %v1669_v21 }
 0x573   : > { %v1255_v32 = vpop.xlane.xlu2 %1254 }
 0x574   : > { %v1269_v34 = vperm.slane %v1255_v32, %v2145_v60  ;;  %v1668_v60 = vld [vmem:[%s2530_s7 + $0x28] sm:$0xff] }
 0x575   : > { %1377 = vmatpush.msrb.mxu2 %v1668_v60 }
 0x576   : > { %v1270_v35 = vsel %vm865_vm6, %v1269_v34, %v1268_v29 }
 0x577   : > { %v1272_v18 = vsel %vm875_vm8, %v1270_v35, %v1271_v59  ;;  %1378 = vmatpush.msrb.mxu2 %v1667_v22 }
 0x578   : > { %v1274_v10 = vsel %vm878_vm9, %v1272_v18, 0.0 }
 0x579   : > { %1275 = vadd.xlane.f32.xlu0 %v1274_v10 }
 0x5b7   : > { %v1204_v39 = vpop.f32.mrf.mxu1 }
 0x5b8   : > { %v1181_v42 = vpop.f32.mrf.mxu0 }
 0x5b9   : > { %v1182_v43 = vadd.f32 %v1181_v42, %v1159_v38 }
 0x5bb   : > { %v1205_v44 = vadd.f32 %v1204_v39, %v1182_v43  ;;  %v1671_v43 = vld [vmem:[%s2531_s8 + $0x10] sm:$0xff] }
 0x5bd   : > { %vm1210_vm1 = vcmp.ge.f32.partialorder %v1205_v44, 0.0  ;;  %v1212_v46 = vmul.f32 0.01, %v1205_v44 }
 0x5bf   : > { %v1214_v47 = vsel %vm1210_vm1, %v1205_v44, %v1212_v46  ;;  %v1207_v50 = vpop.f32.mrf.mxu1 }
 0x5c0   : > { %v1184_v48 = vpop.f32.mrf.mxu0  ;;  %1673 = vmatmul.msk.f32.vlgmr.msrb.gmra.mxu2 %vm613_vm2, %v1214_v47 }
 0x5c1   : > { %v1185_v49 = vadd.f32 %v1184_v48, %v1162_v0 }
 0x5c3   : > { %v1208_v51 = vadd.f32 %v1207_v50, %v1185_v49 }
 0x5c5   : > { %vm1211_vm3 = vcmp.ge.f32.partialorder %v1208_v51, 0.0  ;;  %v1213_v2 = vmul.f32 0.01, %v1208_v51 }
 0x5c7   : > { %v1215_v53 = vsel %vm1211_vm3, %v1208_v51, %v1213_v2 }
 0x5c8   : > { %1674 = vmatmul.msk.f32.gmra.mxu2 %vm613_vm2, %v1215_v53 }
 0x5ec   : > { %v1276_v56 = vpop.xlane.xlu0 %1275 }
 0x5ed   : > { %v1282_v61 = vadd.f32 %v1725_v55, %v1276_v56  ;;  %v1470_v56 = vld [vmem:[%s1899_s23 + $0x10] sm:$0xff] (%p1863_p5) }
 0x5ee   : > { %1471 = vst [vmem:[%s1415_s24 + $0x10] sm:$0xff] (%p1863_p5), %v1470_v56 }
 0x5ef   : > { %v1283_v52 = vsel %vm887_vm12, %v1282_v61, -inf }
 0x5f0   : > { %v1284_v62 = vrot.slane %v1283_v52, 4 }
 0x5f2   : > { %v1285_v63 = vmax.f32 %v1283_v52, %v1284_v62  ;;  %v1474_v52 = vld [vmem:[%s1899_s23 + $0x20] sm:$0xff] (%p1863_p5)  ;;  %v1476_v62 = vld [vmem:[%s1899_s23 + $0x28] sm:$0xff] (%p1863_p5) }
 0x5f3   : > { %1475 = vst [vmem:[%s1415_s24 + $0x20] sm:$0xff] (%p1863_p5), %v1474_v52 }
 0x5f4   : > { %v1286_v54 = vrot.slane %v1285_v63, 2  ;;  %1477 = vst [vmem:[%s1415_s24 + $0x28] sm:$0xff] (%p1863_p5), %v1476_v62 }
 0x5f6   : > { %v1287_v1 = vmax.f32 %v1285_v63, %v1286_v54  ;;  %v1478_v63 = vld [vmem:[%s1899_s23 + $0x30] sm:$0xff] (%p1863_p5)  ;;  %v1480_v54 = vld [vmem:[%s1899_s23 + $0x38] sm:$0xff] (%p1863_p5) }
 0x5f7   : > { %1479 = vst [vmem:[%s1415_s24 + $0x60] sm:$0xff] (%p1863_p5), %v1478_v63 }
 0x5f8   : > { %v1288_v4 = vrot.slane %v1287_v1, 1  ;;  %1481 = vst [vmem:[%s1415_s24 + $0x68] sm:$0xff] (%p1863_p5), %v1480_v54 }
 0x5fa   : > { %v1289_v5 = vmax.f32 %v1287_v1, %v1288_v4  ;;  %v1482_v1 = vld [vmem:[%s1899_s23 + $0x40] sm:$0xff] (%p1863_p5)  ;;  %v1484_v4 = vld [vmem:[%s1899_s23 + $0x48] sm:$0xff] (%p1863_p5) }
 0x5fb   : > { %1483 = vst [vmem:[%s1415_s24 + $0x70] sm:$0xff] (%p1863_p5), %v1482_v1 }
 0x5fc   : > { %v1290_v6 = vsub.f32 %v1282_v61, %v1289_v5  ;;  %v1472_v61 = vld [vmem:[%s1899_s23 + $0x18] sm:$0xff] (%p1863_p5)  ;;  %1485 = vst [vmem:[%s1415_s24 + $0x78] sm:$0xff] (%p1863_p5), %v1484_v4 }
 0x5fd   : > { %1473 = vst [vmem:[%s1415_s24 + $0x18] sm:$0xff] (%p1863_p5), %v1472_v61 }
 0x5fe   : > { %v1291_v7 = vmul.f32 1.442695, %v1290_v6 }
 0x600   : > { %1730 = vpow2.f32 %v1291_v7 }
 0x606   : > { %v1731_v8 = vpop.eup %1730 }
 0x607   : > { %v1293_v9 = vsel %vm887_vm12, %v1731_v8, 0.0 }
 0x608   : > { %v1294_v11 = vrot.slane %v1293_v9, 4 }
 0x60a   : > { %v1295_v12 = vadd.f32 %v1294_v11, %v1293_v9 }
 0x60c   : > { %v1296_v15 = vrot.slane %v1295_v12, 2 }
 0x60e   : > { %v1297_v17 = vadd.f32 %v1296_v15, %v1295_v12 }
 0x610   : > { %v1298_v19 = vrot.slane %v1297_v17, 1 }
 0x612   : > { %v1299_v20 = vadd.f32 %v1298_v19, %v1297_v17 }
 0x614   : > { %1732 = vrcp.f32 %v1299_v20  ;;  %v1311_v26 = vand.u32 2147483648, %v1299_v20  ;;  %v1309_v31 = vand.u32 2147483647, %v1299_v20  ;;  %vm1305_vm5 = vweird.f32 %v1299_v20 }
 0x616   : > { %v1312_v28 = vor.u32 1.1754944e-38, %v1311_v26  ;;  %vm1310_vm7 = vcmp.eq.f32.partialorder %v1309_v31, 8.507059e+37 }
 0x61a   : > { %v1733_v23 = vpop.eup %1732 }
 0x61b   : > { %v1301_v25 = vmul.f32 %v1733_v23, %v1299_v20  ;;  %vm1306_vm4 = vweird.f32 %v1733_v23 }
 0x61c   : > { %vm1307_vm6 = vmor %vm1305_vm5, %vm1306_vm4 }
 0x61d   : > { %v1302_v33 = vsub.f32 1.0, %v1301_v25 }
 0x61f   : > { %v1303_v14 = vmul.f32 %v1733_v23, %v1302_v33 }
 0x621   : > { %v1304_v16 = vadd.f32 %v1733_v23, %v1303_v14 }
 0x623   : > { %v1308_v29 = vsel %vm1307_vm6, %v1733_v23, %v1304_v16 }
 0x624   : > { %v1313_v30 = vsel %vm1310_vm7, %v1312_v28, %v1308_v29 }
 0x625   : > { %v1314_v13 = vmul.f32 %v1731_v8, %v1313_v30 }
 0x627   : > { %v1318_v32 = vperm.slane %v1314_v13, 0  ;;  %v1317_v34 = vrot.slane %v1314_v13, 2  ;;  %v1316_v35 = vrot.slane %v1314_v13, 1 }
 0x629   : > { %1322 = vperm.xlu1 %1720, %v1318_v32   ;;  %v1320_v59 = vperm.slane %v1317_v34, 0  ;;  %v1319_v18 = vperm.slane %v1316_v35, 0 }
 0x62b   : > { %1330 = vperm.xlu0 %1719, %v1320_v59   ;;  %1326 = vperm.xlu2 %1718, %v1319_v18  }
 0x643   : > { %v1380_v10 = vpop.f32.mrf.mxu2 }
 0x644   : > { %v1381_v49 = vadd.f32 %v1671_v43, %v1380_v10 }
 0x685   : > { %v1327_v58 = vpop.permute.xlu2 %1326 }
 0x686   : > { %v1335_v21 = vmul.f32 %v1327_v58, %v2348_v40  ;;  %v1336_v60 = vmul.f32 %v1327_v58, %v2327_v36  ;;  %v1672_v40 = vld [vmem:[%s2531_s8 + $0x18] sm:$0xff]  ;;  %v1383_v36 = vpop.f32.mrf.mxu2 }
 0x687   : > { %v1384_v50 = vadd.f32 %v1672_v40, %v1383_v36 }
 0x688   : > { %v1340_v38 = vsel %vm613_vm2, %v1335_v21, 0.0  ;;  %v1345_v39 = vsel %vm613_vm2, %v1336_v60, 0.0 }
 0x69b   : > { %v1323_v22 = vpop.permute.xlu1 %1322 }
 0x69c   : > { %v1333_v3 = vmul.f32 %v1323_v22, %v2316_v27  ;;  %v1334_v57 = vmul.f32 %v1323_v22, %v2338_v37 }
 0x69d   : > { %v1331_v42 = vpop.permute.xlu0 %1330 }
 0x69e   : > { %v1339_v27 = vsel %vm613_vm2, %v1333_v3, 0.0  ;;  %v1344_v37 = vsel %vm613_vm2, %v1334_v57, 0.0  ;;  %v1337_v44 = vmul.f32 %v1331_v42, %v2351_v41  ;;  %v1338_v45 = vmul.f32 %v1331_v42, %v2366_v24  ;;  %v1466_v41 = vld [vmem:[%s1899_s23] sm:$0xff] (%p1863_p5)  ;;  %v1468_v24 = vld [vmem:[%s1899_s23 + $0x8] sm:$0xff] (%p1863_p5) }
 0x69f   : > { %v1341_v46 = vadd.f32 %v1340_v38, %v1339_v27  ;;  %v1346_v0 = vadd.f32 %v1345_v39, %v1344_v37  ;;  %1467 = vst [vmem:[%s1415_s24] sm:$0xff] (%p1863_p5), %v1466_v41 }
 0x6a0   : > { %v1342_v47 = vsel %vm613_vm2, %v1337_v44, 0.0  ;;  %v1347_v48 = vsel %vm613_vm2, %v1338_v45, 0.0  ;;  %1469 = vst [vmem:[%s1415_s24 + $0x8] sm:$0xff] (%p1863_p5), %v1468_v24 }
 0x6a1   : > { %v1343_v51 = vadd.f32 %v1342_v47, %v1341_v46  ;;  %v1348_v2 = vadd.f32 %v1347_v48, %v1346_v0 }
 0x6a3   : > { %v1386_v53 = vadd.f32 %v1381_v49, %v1343_v51  ;;  %v1387_v55 = vadd.f32 %v1384_v50, %v1348_v2 }
 0x6a4   : > { %1412 = sbr.rel (!%p1863_p5) target bundleno = 1711 (0x6af), region = 114 }
 0x6a5   : > { %1679 = vst.msk [vmem:[%s1899_s23 + $0x50] sm:$0xff] %vm613_vm2, %v1386_v53 }
 0x6a6   : > { %1680 = vst.msk [vmem:[%s1899_s23 + $0x58] sm:$0xff] %vm613_vm2, %v1387_v55 }
 0x6a7   : > { %1396 = vst.msk [vmem:[%s547_s30] sm:$0xff] %vm613_vm2, %v1386_v53 }
 0x6a8   : > { %1397 = vst.msk [vmem:[%s547_s30 + $0x8] sm:$0xff] %vm613_vm2, %v1387_v55 }
 0x6ac   : > { %v1486_v5 = vld [vmem:[%s1899_s23 + $0x50] sm:$0xff] }
 0x6ad   : > { %v1488_v6 = vld [vmem:[%s1899_s23 + $0x58] sm:$0xff]  ;;  %1487 = vst [vmem:[%s1415_s24 + $0x80] sm:$0xff] %v1486_v5 }
 0x6ae   : > { %1489 = vst [vmem:[%s1415_s24 + $0x88] sm:$0xff] %v1488_v6 }
 0x6af PF: > { %p21_p11 = scmp.ge.s32.totalorder %s1851_s29, 4   ;;  %s2553_s25 = smov %s1752_s26 }
 0x6b0   : > { %s2554_s26 = smov %s1861_s15  ;;  %s2555_s27 = smov %s1851_s29 }
 0x6b1   :  { %23 = sbr.rel (!%p21_p11) target bundleno = 5 (0x5), region = 205 }

</bundles_post_ra>
